<compile_context>
chip_gen: v5e
topology: v5e:2x2
jax: 0.10.0
libtpu: 0.0.40
codegen_flags: <defaults>
</compile_context>

<pallas_src>
import math
from functools import partial

import jax
import jax.numpy as jnp
from jax import lax
from jax.experimental import pallas as pl
from jax.experimental.pallas import tpu as pltpu


_ONEHOT_MAX_V = 2048     # use the MXU one-hot gather up to this (padded) vocab size
_V_CHUNK = 256           # one-hot matmul K-chunk (v6e/v7x MXU width)


def _round_up(x, m):
    return (x + m - 1) // m * m


def _hash_u32(x, seed):
    # splitmix32-style stateless mixer: xor/shift/mul only (plain VPU uint32 ops).
    x = x ^ seed
    x = (x ^ (x >> 16)) * jnp.uint32(0x7FEB352D)
    x = (x ^ (x >> 15)) * jnp.uint32(0x846CA68B)
    x = x ^ (x >> 16)
    return x


def _iota_u32(shape, dim):
    return lax.broadcasted_iota(jnp.int32, shape, dim).astype(jnp.uint32)


def _fused_dropout(x, tile_idx, seed_u, p_half):
    """Dropout2d(p_half) over tokens fused with Dropout(p_half) per element."""
    tok_tile, d = x.shape
    scale = jnp.float32(1.0 / ((1.0 - p_half) ** 2))
    thresh32 = jnp.uint32(min(int(p_half * (1 << 32)), (1 << 32) - 1))

    # Per-tile salt keeps counters local (< 2^32) and streams independent per tile.
    tile_salt = (tile_idx * 0x61C88647).astype(jnp.uint32)
    seed_tok = seed_u ^ tile_salt ^ jnp.uint32(0x85EBCA6B)
    seed_elem = seed_u ^ tile_salt ^ jnp.uint32(0x9E3779B9)

    # Per-token mask (Dropout2d zeroes whole embedding vectors): one narrow draw.
    keep_tok = _hash_u32(_iota_u32((tok_tile, 1), 0), seed_tok) >= thresh32

    # Per-element mask (Dropout).  When D is a 256-multiple, draw one 32-bit hash per
    # TWO elements and compare two 16-bit fields -> half the VPU hash work.
    if d % 256 == 0:
        d2 = d // 2
        thresh16 = jnp.uint32(min(int(p_half * (1 << 16)), (1 << 16) - 1))
        ctr = _iota_u32((tok_tile, d2), 0) * jnp.uint32(d2) + _iota_u32((tok_tile, d2), 1)
        h = _hash_u32(ctr, seed_elem)
        fields = jnp.concatenate([h & jnp.uint32(0xFFFF), h >> 16], axis=-1)
        keep_elem = fields >= thresh16
    else:
        ctr = _iota_u32((tok_tile, d), 0) * jnp.uint32(d) + _iota_u32((tok_tile, d), 1)
        keep_elem = _hash_u32(ctr, seed_elem) >= thresh32

    return jnp.where(keep_tok & keep_elem, x * scale, jnp.zeros_like(x))


def _embed_onehot_kernel(seed_ref, ids_ref, emb_ref, out_ref, *,
                         tok_tile, v_pad, p, training):
    # seed_ref: SMEM (1,) scalar-prefetch; ids_ref: (tok_tile, 1) VMEM int32 tile;
    # emb_ref: (v_pad, d_pad) VMEM-resident table; out_ref: (tok_tile, d_pad) tile.
    t = pl.program_id(0)
    ids_col = ids_ref[...]                                     # (tok_tile, 1) int32

    # One-hot MXU gather, chunked over the vocab so temporaries stay small.
    acc = None
    for c in range(v_pad // _V_CHUNK):
        col = lax.broadcasted_iota(jnp.int32, (tok_tile, _V_CHUNK), 1) + c * _V_CHUNK
        onehot = (col == ids_col).astype(jnp.float32)
        part = jnp.dot(onehot, emb_ref[pl.ds(c * _V_CHUNK, _V_CHUNK), :],
                       preferred_element_type=jnp.float32,
                       precision=lax.Precision.HIGHEST)        # exact f32 gather
        acc = part if acc is None else acc + part

    x = acc
    if training and p > 0.0:
        x = _fused_dropout(x, t, seed_ref[0].astype(jnp.uint32), p / 2.0)
    out_ref[...] = x.astype(out_ref.dtype)


def _embed_loop_kernel(seed_ref, ids_ref, emb_ref, out_ref, gth_ref, *,
                       tok_tile, p, training):
    # Fallback for large vocabularies: unrolled gather of 8 sublane-aligned rows at a
    # time (unmasked (8, D) stores), dropout fused before one dense output store.
    t = pl.program_id(0)
    apply_dropout = training and p > 0.0
    dst = gth_ref if apply_dropout else out_ref

    def gather8(j, carry):
        base = pl.multiple_of(j * 8, 8)
        rows = [emb_ref[pl.ds(ids_ref[t * tok_tile + base + r], 1), :]
                for r in range(8)]
        dst[pl.ds(base, 8), :] = jnp.concatenate(rows, axis=0)
        return carry

    lax.fori_loop(0, tok_tile // 8, gather8, 0, unroll=2)

    if apply_dropout:
        x = _fused_dropout(gth_ref[...], t, seed_ref[0].astype(jnp.uint32), p / 2.0)
        out_ref[...] = x.astype(out_ref.dtype)


def _vmem_capacity_bytes():
    try:
        return int(pltpu.get_tpu_info().vmem_capacity_bytes)
    except Exception:
        return 64 << 20   # conservative default = v7x per-core VMEM


def bnode_embedding(ids, embedding, *, dropout=0.0, training=False, seed=0,
                    gather_mode="auto"):
    """JAX/Pallas equivalent of BnodeEmbedding.forward.

    ids:       integer token indices (any shape, e.g. (B, S))
    embedding: (V, D) float32 pretrained embedding table
    returns:   ids.shape + (D,) float32
    """
    orig_shape = tuple(ids.shape)
    N = math.prod(orig_shape) if orig_shape else 1
    V, D = embedding.shape
    embedding = embedding.astype(jnp.float32)

    # Pad the table: lane-dense D (multiple of 128) and MXU-friendly V (multiple of 256).
    d_pad = _round_up(D, 128)
    v_pad = _round_up(V, _V_CHUNK)
    if (v_pad, d_pad) != (V, D):
        emb = jnp.zeros((v_pad, d_pad), jnp.float32).at[:V, :D].set(embedding)
    else:
        emb = embedding

    if gather_mode == "auto":
        gather_mode = "onehot" if v_pad <= _ONEHOT_MAX_V else "loop"

    # Token tile: multiple of 8 sublanes, ~1 MiB of output per grid step.
    rows_budget = max(8, ((1 << 20) // (d_pad * 4)) // 8 * 8)
    tok_tile = min(512, rows_budget, _round_up(N, 8))
    n_pad = _round_up(N, tok_tile)

    ids_flat = ids.reshape(N).astype(jnp.int32)
    if n_pad != N:
        ids_flat = jnp.concatenate([ids_flat, jnp.zeros((n_pad - N,), jnp.int32)])
    seed_arr = jnp.array([seed], dtype=jnp.int32)

    table_bytes = v_pad * d_pad * 4
    tile_bytes = tok_tile * d_pad * 4
    grid = (n_pad // tok_tile,)
    out_shape = jax.ShapeDtypeStruct((n_pad, d_pad), jnp.float32)
    vmem_cap = _vmem_capacity_bytes()

    def build_and_run(single_buffer_table):
        table_kwargs = {}
        if single_buffer_table:
            table_kwargs = dict(pipeline_mode=pl.Buffered(1))
        table_bufs = 1 if single_buffer_table else 2

        if gather_mode == "onehot":
            kernel = partial(_embed_onehot_kernel, tok_tile=tok_tile, v_pad=v_pad,
                             p=float(dropout), training=bool(training))
            grid_spec = pltpu.PrefetchScalarGridSpec(
                num_scalar_prefetch=1,            # seed only -> SMEM
                grid=grid,
                in_specs=[
                    pl.BlockSpec((tok_tile, 1), lambda i, s: (i, 0)),        # ids tile
                    pl.BlockSpec((v_pad, d_pad), lambda i, s: (0, 0),        # table
                                 **table_kwargs),
                ],
                out_specs=pl.BlockSpec((tok_tile, d_pad), lambda i, s: (i, 0)),
                scratch_shapes=[],
            )
            args = (seed_arr, ids_flat.reshape(n_pad, 1), emb)
            extra = 4 * tok_tile * _V_CHUNK * 4    # one-hot / iota temporaries
            flops = 2 * n_pad * v_pad * d_pad
        else:
            kernel = partial(_embed_loop_kernel, tok_tile=tok_tile,
                             p=float(dropout), training=bool(training))
            # TODO(synk): whole-ids SMEM prefetch caps N at SMEM capacity; switch this
            # fallback to per-tile id blocks / DMA gather for very long sequences.
            grid_spec = pltpu.PrefetchScalarGridSpec(
                num_scalar_prefetch=2,            # (seed, ids) -> SMEM
                grid=grid,
                in_specs=[
                    pl.BlockSpec((v_pad, d_pad), lambda i, s, t_ids: (0, 0),
                                 **table_kwargs),
                ],
                out_specs=pl.BlockSpec((tok_tile, d_pad), lambda i, s, t_ids: (i, 0)),
                scratch_shapes=[pltpu.VMEM((tok_tile, d_pad), jnp.float32)],
            )
            args = (seed_arr, ids_flat, emb)
            extra = tile_bytes
            flops = 0

        need = table_bufs * table_bytes + 2 * tile_bytes + extra + (2 << 20)
        # TODO(synk): if `need` exceeds ~0.85 * per-core VMEM, stream the table from HBM
        # instead of forcing residency (see module-level TODO).
        vmem_limit = int(min(max(need, 16 << 20), int(vmem_cap * 0.85)))

        return pl.pallas_call(
            kernel,
            out_shape=out_shape,
            grid_spec=grid_spec,
            compiler_params=pltpu.CompilerParams(
                dimension_semantics=("parallel",),
                vmem_limit_bytes=vmem_limit,
            ),
            cost_estimate=pl.CostEstimate(
                flops=flops, transcendentals=0,
                bytes_accessed=table_bytes + n_pad * d_pad * 4 + n_pad * 4),
        )(*args)

    try:
        out = build_and_run(single_buffer_table=True)
    except Exception:
        # pipeline_mode=pl.Buffered(1) not supported by this jax -> default buffering.
        out = build_and_run(single_buffer_table=False)

    out = out[:N, :D]
    return out.reshape(*orig_shape, D) if orig_shape else out.reshape(D)


if __name__ == "__main__":
    key = jax.random.PRNGKey(0)
    B, S, p = 2, 8, 0.5

    def make_case(k, V, D):
        k_emb, k_ids = jax.random.split(k)
        emb = jax.random.normal(k_emb, (V, D), jnp.float32) / jnp.sqrt(jnp.float32(D))
        ids = jax.random.randint(k_ids, (B, S), 0, V, dtype=jnp.int32)
        return emb, ids

    def check_train(out, ref, p_):
        scale = 1.0 / (1.0 - p_ / 2.0) ** 2
        ok = jnp.isclose(out, 0.0, atol=1e-7) | jnp.isclose(out, ref * scale,
                                                            atol=1e-5, rtol=1e-5)
        assert bool(jnp.all(ok)), "dropout output not in {0, x / (1 - p/2)^2}"
        assert bool(jnp.any(out == 0.0)), "expected some dropped elements"
        assert bool(jnp.any(out != 0.0)), "expected some kept elements"

    k1, k2, k3 = jax.random.split(key, 3)

    # Case A: one-hot MXU gather, D=128 (full 32-bit dropout-hash path).
    emb_a, ids_a = make_case(k1, 64, 128)
    ref_a = emb_a[ids_a]
    out_eval = jax.block_until_ready(
        bnode_embedding(ids_a, emb_a, dropout=p, training=False))
    assert out_eval.shape == (B, S, 128)
    assert jnp.allclose(out_eval, ref_a, atol=1e-6), "one-hot gather mismatch (eval)"
    out_train = jax.block_until_ready(
        bnode_embedding(ids_a, emb_a, dropout=p, training=True, seed=123))
    check_train(out_train, ref_a, p)

    # Case B: one-hot gather, D=256 (packed 16-bit dropout-hash path).
    emb_b, ids_b = make_case(k2, 64, 256)
    out_b = jax.block_until_ready(
        bnode_embedding(ids_b, emb_b, dropout=p, training=True, seed=7))
    check_train(out_b, emb_b[ids_b], p)

    # Case C: forced loop-gather fallback (path used for large vocabularies).
    emb_c, ids_c = make_case(k3, 64, 128)
    ref_c = emb_c[ids_c]
    out_c_eval = jax.block_until_ready(
        bnode_embedding(ids_c, emb_c, dropout=p, training=False, gather_mode="loop"))
    assert jnp.allclose(out_c_eval, ref_c, atol=1e-6), "loop gather mismatch (eval)"
    out_c_train = jax.block_until_ready(
        bnode_embedding(ids_c, emb_c, dropout=p, training=True, seed=11,
                        gather_mode="loop"))
    check_train(out_c_train, ref_c, p)

    print("KERNEL_OK")
</pallas_src>

<mosaic_0001>
module attributes {stable_mosaic.version = 11 : i64} {
  func.func @_embed_onehot_kernel(%arg0: i32, %arg1: memref<1xi32, #tpu.memory_space<smem>>, %arg2: memref<16x1xi32, #tpu.memory_space<vmem>>, %arg3: memref<256x128xf32, #tpu.memory_space<vmem>>, %arg4: memref<16x128xf32, #tpu.memory_space<vmem>>) attributes {dimension_semantics = [#tpu.dimension_semantics<parallel>], iteration_bounds = array<i64: 1>, scalar_prefetch = 1 : i64, scratch_operands = 0 : i64, tpu.core_type = #tpu.core_type<tc>, window_params = [{transform_indices = @transform_0, window_bounds = array<i64: 16, 1>}, {pipeline_mode = #tpu.pipeline_mode<synchronous>, transform_indices = @transform_1, window_bounds = array<i64: 256, 128>}, {transform_indices = @transform_2, window_bounds = array<i64: 16, 128>}]} {
    %c0 = arith.constant 0 : index
    %c0_0 = arith.constant 0 : index
    %0 = vector.load %arg2[%c0, %c0_0] : memref<16x1xi32, #tpu.memory_space<vmem>>, vector<16x1xi32>
    %1 = tpu.iota {dimensions = array<i32: 1>} : vector<16x256xi32>
    %c0_i32 = arith.constant 0 : i32
    %2 = vector.broadcast %c0_i32 : i32 to vector<16x256xi32>
    %3 = arith.addi %1, %2 : vector<16x256xi32>
    %4 = vector.broadcast %0 : vector<16x1xi32> to vector<16x256xi32>
    %5 = arith.cmpi eq, %3, %4 : vector<16x256xi32>
    %6 = arith.extui %5 : vector<16x256xi1> to vector<16x256xi32>
    %7 = arith.sitofp %6 : vector<16x256xi32> to vector<16x256xf32>
    %c0_1 = arith.constant 0 : index
    %c0_2 = arith.constant 0 : index
    %8 = vector.load %arg3[%c0_1, %c0_2] : memref<256x128xf32, #tpu.memory_space<vmem>>, vector<256x128xf32>
    %cst = arith.constant dense<0.000000e+00> : vector<16x128xf32>
    %9 = tpu.matmul %7, %8, %cst {dimension_numbers = #tpu.dot_dimension_numbers<[1], [0], [0], [1], [0, 0, 1, 1], [], []>, precision = #tpu.contract_precision<fp32>} : vector<16x256xf32>, vector<256x128xf32>, vector<16x128xf32> -> vector<16x128xf32>
    %c0_3 = arith.constant 0 : index
    %c0_4 = arith.constant 0 : index
    %10 = vector.load %arg4[%c0_3, %c0_4] : memref<16x128xf32, #tpu.memory_space<vmem>>, vector<16x128xf32>
    tpu.vector_store %arg4[%c0_3, %c0_4], %9 {strides = array<i32>} : memref<16x128xf32, #tpu.memory_space<vmem>>, vector<16x128xf32>,
    return
  }
  func.func @transform_0(%arg0: i32, %arg1: memref<1xi32, #tpu.memory_space<smem>>) -> (i32, i32) {
    %c0_i32 = arith.constant 0 : i32
    %c0_i32_0 = arith.constant 0 : i32
    return %arg0, %c0_i32 : i32, i32
  }
  func.func @transform_1(%arg0: i32, %arg1: memref<1xi32, #tpu.memory_space<smem>>) -> (i32, i32) {
    %c0_i32 = arith.constant 0 : i32
    %c0_i32_0 = arith.constant 0 : i32
    %c0_i32_1 = arith.constant 0 : i32
    return %c0_i32, %c0_i32_0 : i32, i32
  }
  func.func @transform_2(%arg0: i32, %arg1: memref<1xi32, #tpu.memory_space<smem>>) -> (i32, i32) {
    %c0_i32 = arith.constant 0 : i32
    %c0_i32_0 = arith.constant 0 : i32
    return %arg0, %c0_i32 : i32, i32
  }
}

module attributes {stable_mosaic.version = 11 : i64} {
  func.func @_embed_onehot_kernel(%arg0: i32, %arg1: memref<1xi32, #tpu.memory_space<smem>>, %arg2: memref<16x1xi32, #tpu.memory_space<vmem>>, %arg3: memref<256x128xf32, #tpu.memory_space<vmem>>, %arg4: memref<16x128xf32, #tpu.memory_space<vmem>>) attributes {dimension_semantics = [#tpu.dimension_semantics<parallel>], iteration_bounds = array<i64: 1>, scalar_prefetch = 1 : i64, scratch_operands = 0 : i64, tpu.core_type = #tpu.core_type<tc>, window_params = [{transform_indices = @transform_0, window_bounds = array<i64: 16, 1>}, {pipeline_mode = #tpu.pipeline_mode<synchronous>, transform_indices = @transform_1, window_bounds = array<i64: 256, 128>}, {transform_indices = @transform_2, window_bounds = array<i64: 16, 128>}]} {
    %c0 = arith.constant 0 : index
    %c0_0 = arith.constant 0 : index
    %0 = vector.load %arg2[%c0, %c0_0] : memref<16x1xi32, #tpu.memory_space<vmem>>, vector<16x1xi32>
    %1 = tpu.iota {dimensions = array<i32: 1>} : vector<16x256xi32>
    %c0_i32 = arith.constant 0 : i32
    %2 = vector.broadcast %c0_i32 : i32 to vector<16x256xi32>
    %3 = arith.addi %1, %2 : vector<16x256xi32>
    %4 = vector.broadcast %0 : vector<16x1xi32> to vector<16x256xi32>
    %5 = arith.cmpi eq, %3, %4 : vector<16x256xi32>
    %6 = arith.extui %5 : vector<16x256xi1> to vector<16x256xi32>
    %7 = arith.sitofp %6 : vector<16x256xi32> to vector<16x256xf32>
    %c0_1 = arith.constant 0 : index
    %c0_2 = arith.constant 0 : index
    %8 = vector.load %arg3[%c0_1, %c0_2] : memref<256x128xf32, #tpu.memory_space<vmem>>, vector<256x128xf32>
    %cst = arith.constant dense<0.000000e+00> : vector<16x128xf32>
    %9 = tpu.matmul %7, %8, %cst {dimension_numbers = #tpu.dot_dimension_numbers<[1], [0], [0], [1], [0, 0, 1, 1], [], []>, precision = #tpu.contract_precision<fp32>} : vector<16x256xf32>, vector<256x128xf32>, vector<16x128xf32> -> vector<16x128xf32>
    %c0_3 = arith.constant 0 : index
    %c0_4 = arith.constant 0 : index
    %10 = vector.load %arg4[%c0_3, %c0_4] : memref<16x128xf32, #tpu.memory_space<vmem>>, vector<16x128xf32>
    tpu.vector_store %arg4[%c0_3, %c0_4], %9 {strides = array<i32>} : memref<16x128xf32, #tpu.memory_space<vmem>>, vector<16x128xf32>,
    return
  }
  func.func @transform_0(%arg0: i32, %arg1: memref<1xi32, #tpu.memory_space<smem>>) -> (i32, i32) {
    %c0_i32 = arith.constant 0 : i32
    %c0_i32_0 = arith.constant 0 : i32
    return %arg0, %c0_i32 : i32, i32
  }
  func.func @transform_1(%arg0: i32, %arg1: memref<1xi32, #tpu.memory_space<smem>>) -> (i32, i32) {
    %c0_i32 = arith.constant 0 : i32
    %c0_i32_0 = arith.constant 0 : i32
    %c0_i32_1 = arith.constant 0 : i32
    return %c0_i32, %c0_i32_0 : i32, i32
  }
  func.func @transform_2(%arg0: i32, %arg1: memref<1xi32, #tpu.memory_space<smem>>) -> (i32, i32) {
    %c0_i32 = arith.constant 0 : i32
    %c0_i32_0 = arith.constant 0 : i32
    return %arg0, %c0_i32 : i32, i32
  }
}

</mosaic_0001>

<bundles_post_ra>
// kernel: tpu_custom_call.1
= control target key start
LH: loop header
LB: loop body
LE: loop exit
PB: predicated region body
PF: predicated region fallthrough
CT: control target
= control target key end

     0   :  { %9 = vsyncpa [#allocation5], 0  ;;  %s1533_s0 = inlined_call_operand.<no memory space> [shape: s32[1], index: 0, kind: input, shape index: {}]   ;;  %s1534_s1 = inlined_call_operand.vmem [shape: s32[16,1], index: 1, kind: input, shape index: {}]   ;;  %s1535_s2 = inlined_call_operand.hbm [shape: f32[256,128], index: 2, kind: input, shape index: {}]   ;;  %s1536_s3 = inlined_call_operand.hbm [shape: f32[16,128], index: 3, kind: output, shape index: {}]  }
   0x1   :  { %10 = vsyncpa [#allocation6], 0  ;;  %s17_s14 = sshll.u32 %s1535_s2, 4  ;;  %s926_s15 = smov [#allocation4]   ;;  %s18_s14 = int_to_ptr.hbm [resolvable:$true] %s17_s14 }
   0x2   :  { %s19_s16 = sshll.u32 %s926_s15, 4  ;;  %s927_s0 = smov 128   ;;  %s20_s16 = int_to_ptr.vmem [resolvable:$true] %s19_s16 }
   0x3   :  { %s928_s17 = smov 8  }
   0x4   :  { %25 = dma.hbm_to_vmem [thread:$0]  %s18_s14, 4096, %s20_s16, [#allocation5], %s927_s0, %s927_s0, %s928_s17  }
   0x5   :  { %922 = dma.done.wait [#allocation5], 4096  }
   0x6   :  { %923 = vsyncadd [#allocation5], 4294963200  ;;  %v929_v0 = vmov 0   ;;  %v30_v1 = vld [vmem:[%s1534_s1] sm:$0xff]  ;;  %v68_v2 = vld [vmem:[#allocation4 + $0x78] sm:$0xff]  ;;  %s837_s24 = sshll.u32 %s1536_s3, 4  ;;  %s838_s24 = int_to_ptr.hbm [resolvable:$true] %s837_s24 }
   0x7   :  { %873 = vset.pattern.permute.xlu0 %v929_v0  ;;  %v962_v3 = vand.u32 4294901760, %v68_v2  ;;  %v67_v4 = vld [vmem:[#allocation4 + $0x70] sm:$0xff]  ;;  %v66_v5 = vld [vmem:[#allocation4 + $0x68] sm:$0xff]  ;;  %v65_v6 = vld [vmem:[#allocation4 + $0x60] sm:$0xff] }
   0x8   :  { %36 = vperm.xlu0 %873, %v30_v1   ;;  %v964_v7 = vand.u32 4294901760, %v67_v4  ;;  %v966_v8 = vand.u32 4294901760, %v66_v5  ;;  %v968_v9 = vand.u32 4294901760, %v65_v6  ;;  %v64_v10 = vld [vmem:[#allocation4 + $0x58] sm:$0xff]  ;;  %v63_v11 = vld [vmem:[#allocation4 + $0x50] sm:$0xff]  ;;  %v62_v12 = vld [vmem:[#allocation4 + $0x48] sm:$0xff] }
   0x9   :  { %v971_v13 = vsub.f32 %v68_v2, %v962_v3  ;;  %299 = vmatpush.msra.mxu3 %v962_v3  ;;  %v974_v14 = vand.u32 4294901760, %v64_v10  ;;  %86 = vmatpush.msra.mxu0 %v962_v3  ;;  %v977_v15 = vand.u32 4294901760, %v63_v11  ;;  %v979_v16 = vand.u32 4294901760, %v62_v12  ;;  %v61_v17 = vld [vmem:[#allocation4 + $0x40] sm:$0xff]  ;;  %v31_v25 = vld [vmem:[%s1534_s1 + $0x8] sm:$0xff]  ;;  %v60_v35 = vld [vmem:[#allocation4 + $0x38] sm:$0xff] }
   0xa   :  { %v982_v18 = vsub.f32 %v67_v4, %v964_v7  ;;  %v985_v19 = vsub.f32 %v66_v5, %v966_v8  ;;  %v988_v20 = vsub.f32 %v65_v6, %v968_v9  ;;  %v990_v21 = vand.u32 4294901760, %v61_v17  ;;  %v59_v39 = vld [vmem:[#allocation4 + $0x30] sm:$0xff]  ;;  %v58_v40 = vld [vmem:[#allocation4 + $0x28] sm:$0xff]  ;;  %v57_v42 = vld [vmem:[#allocation4 + $0x20] sm:$0xff]  ;;  %s932_s1 = smov [#allocation7]  }
   0xb   :  { %v1553_v22 = vand.u32 4294901760, %v971_v13  ;;  %241 = vmatpush.msra.mxu2 %v971_v13  ;;  %301 = vmatpush.msra.mxu3 %v964_v7  ;;  %v996_v23 = vsub.f32 %v64_v10, %v974_v14  ;;  %v999_v24 = vsub.f32 %v63_v11, %v977_v15  ;;  %v1015_v31 = vsub.f32 %v62_v12, %v979_v16  ;;  %v56_v47 = vld [vmem:[#allocation4 + $0x18] sm:$0xff]  ;;  %v55_v55 = vld [vmem:[#allocation4 + $0x10] sm:$0xff]  ;;  %v54_v62 = vld [vmem:[#allocation4 + $0x8] sm:$0xff]  ;;  %s835_s21 = sshll.u32 %s932_s1, 4  ;;  %s836_s21 = int_to_ptr.vmem [resolvable:$true] %s835_s21 }
   0xc   :  { %v1550_v26 = vand.u32 4294901760, %v982_v18  ;;  %v1549_v27 = vand.u32 4294901760, %v985_v19  ;;  %v1546_v28 = vand.u32 4294901760, %v988_v20  ;;  %88 = vmatpush.msra.mxu0 %v964_v7  ;;  %v1025_v34 = vsub.f32 %v61_v17, %v990_v21  ;;  %v53_v5 = vld [vmem:[#allocation4] sm:$0xff]  ;;  %v84_v11 = vld [vmem:[#allocation4 + $0xf8] sm:$0xff] }
   0xd   :  { %v137_v29 = vsub.f32 %v971_v13, %v1553_v22  ;;  %244 = vmatpush.msra.mxu2 %v982_v18  ;;  %v1545_v30 = vand.u32 4294901760, %v996_v23  ;;  %303 = vmatpush.msra.mxu3 %v966_v8  ;;  %v1544_v38 = vand.u32 4294901760, %v999_v24  ;;  %v1542_v45 = vand.u32 4294901760, %v1015_v31 }
   0xe   :  { %v143_v32 = vsub.f32 %v982_v18, %v1550_v26  ;;  %v149_v33 = vsub.f32 %v985_v19, %v1549_v27  ;;  %90 = vmatpush.msra.mxu0 %v966_v8  ;;  %v155_v37 = vsub.f32 %v988_v20, %v1546_v28  ;;  %v1039_v46 = vand.u32 4294901760, %v60_v35 }
   0xf   :  { %v138_v36 = vand.u32 4294901760, %v137_v29  ;;  %247 = vmatpush.msra.mxu2 %v985_v19  ;;  %305 = vmatpush.msra.mxu3 %v968_v9  ;;  %v161_v44 = vsub.f32 %v996_v23, %v1545_v30  ;;  %v1541_v48 = vand.u32 4294901760, %v1025_v34  ;;  %v1044_v49 = vand.u32 4294901760, %v59_v39  ;;  %v83_v29 = vld [vmem:[#allocation4 + $0xf0] sm:$0xff] }
  0x10   :  { %39 = vperm.xlu0 %873, %v31_v25   ;;  %v144_v41 = vand.u32 4294901760, %v143_v32  ;;  %92 = vmatpush.msra.mxu0 %v968_v9  ;;  %v150_v43 = vand.u32 4294901760, %v149_v33  ;;  %v1046_v50 = vand.u32 4294901760, %v58_v40  ;;  %v156_v51 = vand.u32 4294901760, %v155_v37  ;;  %v82_v32 = vld [vmem:[#allocation4 + $0xe8] sm:$0xff] }
  0x11   :  { %139 = vmatpush.msra.mxu1 %v138_v36  ;;  %250 = vmatpush.msra.mxu2 %v988_v20  ;;  %v167_v52 = vsub.f32 %v999_v24, %v1544_v38  ;;  %v1053_v53 = vsub.f32 %v60_v35, %v1039_v46  ;;  %v1055_v54 = vand.u32 4294901760, %v57_v42  ;;  %v1059_v56 = vsub.f32 %v59_v39, %v1044_v49  ;;  %v81_v36 = vld [vmem:[#allocation4 + $0xe0] sm:$0xff] }
  0x12   :  { %307 = vmatpush.msra.mxu3 %v974_v14  ;;  %94 = vmatpush.msra.mxu0 %v974_v14  ;;  %v1062_v57 = vand.u32 4294901760, %v56_v47  ;;  %v162_v58 = vand.u32 4294901760, %v161_v44  ;;  %v173_v59 = vsub.f32 %v1015_v31, %v1542_v45  ;;  %v1070_v61 = vsub.f32 %v58_v40, %v1046_v50 }
  0x13   :  { %145 = vmatpush.msra.mxu1 %v144_v41  ;;  %253 = vmatpush.msra.mxu2 %v996_v23  ;;  %v1539_v60 = vand.u32 4294901760, %v1053_v53  ;;  %v1074_v63 = vand.u32 4294901760, %v55_v55  ;;  %v168_v0 = vand.u32 4294901760, %v167_v52  ;;  %v179_v1 = vsub.f32 %v1025_v34, %v1541_v48 }
  0x14   :  { %309 = vmatpush.msra.mxu3 %v977_v15  ;;  %96 = vmatpush.msra.mxu0 %v977_v15  ;;  %v1538_v2 = vand.u32 4294901760, %v1059_v56  ;;  %v1082_v4 = vsub.f32 %v57_v42, %v1055_v54  ;;  %v1087_v6 = vsub.f32 %v56_v47, %v1062_v57  ;;  %v1089_v10 = vand.u32 4294901760, %v54_v62 }
  0x15   :  { %151 = vmatpush.msra.mxu1 %v150_v43  ;;  %256 = vmatpush.msra.mxu2 %v999_v24  ;;  %v174_v12 = vand.u32 4294901760, %v173_v59  ;;  %v185_v17 = vsub.f32 %v1053_v53, %v1539_v60  ;;  %v1537_v25 = vand.u32 4294901760, %v1070_v61  ;;  %v1099_v33 = vsub.f32 %v55_v55, %v1074_v63 }
  0x16   :  { %311 = vmatpush.msra.mxu3 %v979_v16  ;;  %98 = vmatpush.msra.mxu0 %v979_v16  ;;  %v1101_v35 = vand.u32 4294901760, %v53_v5  ;;  %v180_v37 = vand.u32 4294901760, %v179_v1  ;;  %v191_v39 = vsub.f32 %v1059_v56, %v1538_v2  ;;  %v1540_v40 = vand.u32 4294901760, %v1082_v4 }
  0x17   :  { %157 = vmatpush.msra.mxu1 %v156_v51  ;;  %259 = vmatpush.msra.mxu2 %v1015_v31  ;;  %v1108_v41 = vand.u32 4294901760, %v84_v11  ;;  %v1543_v42 = vand.u32 4294901760, %v1087_v6  ;;  %v1114_v43 = vsub.f32 %v54_v62, %v1089_v10  ;;  %v1116_v44 = vand.u32 4294901760, %v83_v29  ;;  %v80_v51 = vld [vmem:[#allocation4 + $0xd8] sm:$0xff]  ;;  %v79_v62 = vld [vmem:[#allocation4 + $0xd0] sm:$0xff] }
  0x18   :  { %313 = vmatpush.msra.mxu3 %v990_v21  ;;  %100 = vmatpush.msra.mxu0 %v990_v21  ;;  %1565 = vst [vmem:[#allocation10_spill] sm:$0xff] %v1101_v35  ;;  %v1118_v47 = vand.u32 4294901760, %v82_v32  ;;  %v186_v52 = vand.u32 4294901760, %v185_v17  ;;  %v197_v55 = vsub.f32 %v1070_v61, %v1537_v25  ;;  %v1127_v59 = vand.u32 4294901760, %v81_v36 }
  0x19   :  { %163 = vmatpush.msra.mxu1 %v162_v58  ;;  %262 = vmatpush.msra.mxu2 %v1025_v34  ;;  %v1125_v58 = vsub.f32 %v84_v11, %v1108_v41  ;;  %v1133_v1 = vsub.f32 %v53_v5, %v1101_v35  ;;  %v192_v11 = vand.u32 4294901760, %v191_v39  ;;  %v203_v25 = vsub.f32 %v1082_v4, %v1540_v40 }
  0x1a   :  { %315 = vmatpush.msra.mxu3 %v1039_v46  ;;  %102 = vmatpush.msra.mxu0 %v1039_v46  ;;  %v1139_v17 = vsub.f32 %v82_v32, %v1118_v47  ;;  %v1146_v60 = vand.u32 4294901760, %v80_v51  ;;  %v78_v32 = vld [vmem:[#allocation4 + $0xc8] sm:$0xff]  ;;  %v209_v39 = vsub.f32 %v1087_v6, %v1543_v42  ;;  %v1552_v40 = vand.u32 4294901760, %v1114_v43  ;;  %v77_v42 = vld [vmem:[#allocation4 + $0xc0] sm:$0xff] }
  0x1b   :  { %169 = vmatpush.msra.mxu1 %v168_v0  ;;  %265 = vmatpush.msra.mxu2 %v1053_v53  ;;  %1566 = vst [vmem:[#allocation11_spill] sm:$0xff] %v1125_v58  ;;  %v1548_v0 = vand.u32 4294901760, %v1099_v33  ;;  %v1547_v2 = vand.u32 4294901760, %v1125_v58  ;;  %v1159_v48 = vsub.f32 %v81_v36, %v1127_v59  ;;  %v1554_v45 = vand.u32 4294901760, %v1133_v1 }
  0x1c   :  { %317 = vmatpush.msra.mxu3 %v1044_v49  ;;  %104 = vmatpush.msra.mxu0 %v1044_v49  ;;  %1568 = vst [vmem:[#allocation13_spill] sm:$0xff] %v1139_v17  ;;  %v204_v38 = vand.u32 4294901760, %v203_v25  ;;  %v1173_v30 = vsub.f32 %v80_v51, %v1146_v60  ;;  %v1175_v28 = vand.u32 4294901760, %v78_v32  ;;  %v221_v51 = vsub.f32 %v1114_v43, %v1552_v40 }
  0x1d   :  { %175 = vmatpush.msra.mxu1 %v174_v12  ;;  %268 = vmatpush.msra.mxu2 %v1059_v56  ;;  %v1136_v12 = vsub.f32 %v83_v29, %v1116_v44  ;;  %v1151_v29 = vand.u32 4294901760, %v79_v62  ;;  %1569 = vst [vmem:[#allocation14_spill] sm:$0xff] %v1159_v48  ;;  %v215_v36 = vsub.f32 %v1099_v33, %v1548_v0  ;;  %v210_v0 = vand.u32 4294901760, %v209_v39  ;;  %v75_v39 = vld [vmem:[#allocation4 + $0xb0] sm:$0xff] }
  0x1e   :  { %319 = vmatpush.msra.mxu3 %v1046_v50  ;;  %106 = vmatpush.msra.mxu0 %v1046_v50  ;;  %v1190_v26 = vand.u32 4294901760, %v77_v42  ;;  %v1203_v27 = vsub.f32 %v78_v32, %v1175_v28 }
  0x1f   :  { %1567 = vst [vmem:[#allocation12_spill] sm:$0xff] %v1136_v12  ;;  %181 = vmatpush.msra.mxu1 %v180_v37  ;;  %271 = vmatpush.msra.mxu2 %v1070_v61  ;;  %v1551_v5 = vand.u32 4294901760, %v1136_v12  ;;  %v198_v37 = vand.u32 4294901760, %v197_v55  ;;  %v1557_v55 = vand.u32 4294901760, %v1139_v17  ;;  %v1183_v25 = vsub.f32 %v79_v62, %v1151_v29 }
  0x20   :  { %321 = vmatpush.msra.mxu3 %v1055_v54  ;;  %108 = vmatpush.msra.mxu0 %v1055_v54  ;;  %v216_v40 = vand.u32 4294901760, %v215_v36  ;;  %v1570_v36 = vand.u32 4294901760, %v1159_v48  ;;  %v1215_v32 = vsub.f32 %v77_v42, %v1190_v26 }
  0x21   :  { %187 = vmatpush.msra.mxu1 %v186_v52  ;;  %274 = vmatpush.msra.mxu2 %v1082_v4  ;;  %v509_v52 = vsub.f32 %v1125_v58, %v1547_v2  ;;  %v76_v2 = vld [vmem:[#allocation4 + $0xb8] sm:$0xff] }
  0x22   :  { %323 = vmatpush.msra.mxu3 %v1062_v57  ;;  %110 = vmatpush.msra.mxu0 %v1062_v57  ;;  %v527_v22 = vsub.f32 %v1159_v48, %v1570_v36  ;;  %v544_v36 = vand.u32 4294901760, %v1203_v27 }
  0x23   :  { %193 = vmatpush.msra.mxu1 %v192_v11  ;;  %277 = vmatpush.msra.mxu2 %v1087_v6  ;;  %v515_v11 = vsub.f32 %v1136_v12, %v1551_v5  ;;  %v227_v5 = vsub.f32 %v1133_v1, %v1554_v45  ;;  %v510_v62 = vand.u32 4294901760, %v509_v52  ;;  %v1205_v45 = vand.u32 4294901760, %v76_v2  ;;  %v73_v12 = vld [vmem:[#allocation4 + $0xa0] sm:$0xff] }
  0x24   :  { %325 = vmatpush.msra.mxu3 %v1074_v63  ;;  %112 = vmatpush.msra.mxu0 %v1074_v63 }
  0x25   :  { %199 = vmatpush.msra.mxu1 %v198_v37  ;;  %280 = vmatpush.msra.mxu2 %v1099_v33  ;;  %v521_v37 = vsub.f32 %v1139_v17, %v1557_v55  ;;  %v516_v52 = vand.u32 4294901760, %v515_v11  ;;  %v74_v55 = vld [vmem:[#allocation4 + $0xa8] sm:$0xff]  ;;  %v1217_v17 = vand.u32 4294901760, %v75_v39  ;;  %v228_v58 = vand.u32 4294901760, %v227_v5 }
  0x26   :  { %327 = vmatpush.msra.mxu3 %v1089_v10  ;;  %114 = vmatpush.msra.mxu0 %v1089_v10  ;;  %v1227_v42 = vsub.f32 %v76_v2, %v1205_v45  ;;  %v1229_v48 = vand.u32 4294901760, %v74_v55  ;;  %v1573_v5 = vand.u32 4294901760, %v1183_v25  ;;  %v1241_v2 = vand.u32 4294901760, %v73_v12 }
  0x27   :  { %205 = vmatpush.msra.mxu1 %v204_v38  ;;  %283 = vmatpush.msra.mxu2 %v1114_v43  ;;  %v222_v38 = vand.u32 4294901760, %v221_v51  ;;  %v522_v11 = vand.u32 4294901760, %v521_v37  ;;  %v1572_v51 = vand.u32 4294901760, %v1173_v30  ;;  %v550_v37 = vand.u32 4294901760, %v1215_v32 }
  0x28   :  { %329 = vmatpush.msra.mxu3 %v1101_v35  ;;  %116 = vmatpush.msra.mxu0 %v1101_v35 }
  0x29   :  { %211 = vmatpush.msra.mxu1 %v210_v0  ;;  %286 = vmatpush.msra.mxu2 %v1133_v1  ;;  %v1571_v0 = vand.u32 4294901760, %v971_v13  ;;  %v533_v35 = vsub.f32 %v1173_v30, %v1572_v51  ;;  %v1574_v13 = vand.u32 4294901760, %v982_v18  ;;  %v545_v18 = vsub.f32 %v1203_v27, %v544_v36 }
  0x2a   :  { %511 = vmatpush.msrb.mxu3 %v510_v62  ;;  %v528_v62 = vand.u32 4294901760, %v527_v22  ;;  %v556_v22 = vand.u32 4294901760, %v1227_v42 }
  0x2b   :  { %458 = vmatpush.msrb.mxu2 %v1108_v41  ;;  %217 = vmatpush.msra.mxu1 %v216_v40  ;;  %v539_v40 = vsub.f32 %v1183_v25, %v1573_v5  ;;  %v534_v51 = vand.u32 4294901760, %v533_v35  ;;  %v551_v35 = vsub.f32 %v1215_v32, %v550_v37 }
  0x2c   :  { %346 = vmatpush.msrb.mxu0 %v1571_v0  ;;  %517 = vmatpush.msrb.mxu3 %v516_v52  ;;  %v1239_v0 = vsub.f32 %v75_v39, %v1217_v17  ;;  %v1575_v52 = vand.u32 4294901760, %v985_v19 }
  0x2d   :  { %460 = vmatpush.msrb.mxu2 %v1116_v44  ;;  %223 = vmatpush.msra.mxu1 %v222_v38  ;;  %v1251_v38 = vsub.f32 %v74_v55, %v1229_v48  ;;  %v540_v19 = vand.u32 4294901760, %v539_v40  ;;  %v557_v55 = vsub.f32 %v1227_v42, %v556_v22 }
  0x2e   :  { %350 = vmatpush.msrb.mxu0 %v1574_v13  ;;  %523 = vmatpush.msrb.mxu3 %v522_v11  ;;  %v562_v39 = vand.u32 4294901760, %v1239_v0  ;;  %v1262_v11 = vsub.f32 %v73_v12, %v1241_v2  ;;  %v552_v12 = vand.u32 4294901760, %v551_v35 }
  0x2f   :  { %462 = vmatpush.msrb.mxu2 %v1118_v47  ;;  %229 = vmatpush.msra.mxu1 %v228_v58  ;;  %v1576_v58 = vand.u32 4294901760, %v988_v20  ;;  %v546_v20 = vand.u32 4294901760, %v545_v18  ;;  %v568_v5 = vand.u32 4294901760, %v1251_v38  ;;  %v558_v13 = vand.u32 4294901760, %v557_v55 }
  0x30   :  { %354 = vmatpush.msrb.mxu0 %v1575_v52  ;;  %529 = vmatpush.msrb.mxu3 %v528_v62  ;;  %v574_v40 = vand.u32 4294901760, %v1262_v11  ;;  %v1580_v62 = vand.u32 4294901760, %v1025_v34  ;;  %v1582_v34 = vand.u32 4294901760, %v1059_v56  ;;  %v1586_v56 = vand.u32 4294901760, %v1099_v33 }
  0x31   :  { %417 = vmatpush.msrb.mxu1 %v962_v3  ;;  %464 = vmatpush.msrb.mxu2 %v1127_v59  ;;  %v1577_v3 = vand.u32 4294901760, %v996_v23  ;;  %v563_v23 = vsub.f32 %v1239_v0, %v562_v39 }
  0x32   :  { %358 = vmatpush.msrb.mxu0 %v1576_v58  ;;  %535 = vmatpush.msrb.mxu3 %v534_v51  ;;  %v575_v52 = vsub.f32 %v1262_v11, %v574_v40  ;;  %v72_v51 = vld [vmem:[#allocation4 + $0x98] sm:$0xff] }
  0x33   :  { %419 = vmatpush.msrb.mxu1 %v964_v7  ;;  %466 = vmatpush.msrb.mxu2 %v1146_v60  ;;  %v1578_v7 = vand.u32 4294901760, %v999_v24  ;;  %v569_v24 = vsub.f32 %v1251_v38, %v568_v5 }
  0x34   :  { %362 = vmatpush.msrb.mxu0 %v1577_v3  ;;  %541 = vmatpush.msrb.mxu3 %v540_v19  ;;  %v576_v18 = vand.u32 4294901760, %v575_v52 }
  0x35   :  { %421 = vmatpush.msrb.mxu1 %v966_v8  ;;  %468 = vmatpush.msrb.mxu2 %v1151_v29  ;;  %v1579_v8 = vand.u32 4294901760, %v1015_v31  ;;  %v1581_v31 = vand.u32 4294901760, %v1053_v53  ;;  %v1584_v53 = vand.u32 4294901760, %v1082_v4 }
  0x36   :  { %366 = vmatpush.msrb.mxu0 %v1578_v7  ;;  %547 = vmatpush.msrb.mxu3 %v546_v20 }
  0x37   :  { %423 = vmatpush.msrb.mxu1 %v968_v9  ;;  %470 = vmatpush.msrb.mxu2 %v1175_v28  ;;  %v564_v9 = vand.u32 4294901760, %v563_v23 }
  0x38   :  { %370 = vmatpush.msrb.mxu0 %v1579_v8  ;;  %553 = vmatpush.msrb.mxu3 %v552_v12 }
  0x39   :  { %425 = vmatpush.msrb.mxu1 %v974_v14  ;;  %472 = vmatpush.msrb.mxu2 %v1190_v26  ;;  %v570_v14 = vand.u32 4294901760, %v569_v24 }
  0x3a   :  { %374 = vmatpush.msrb.mxu0 %v1580_v62  ;;  %559 = vmatpush.msrb.mxu3 %v558_v13  ;;  %v32_v62 = vlaneseq }
  0x3b   :  { %427 = vmatpush.msrb.mxu1 %v977_v15  ;;  %474 = vmatpush.msrb.mxu2 %v1205_v45  ;;  %v1583_v15 = vand.u32 4294901760, %v1070_v61  ;;  %v1588_v61 = vand.u32 4294901760, %v1133_v1 }
  0x3c   :  { %378 = vmatpush.msrb.mxu0 %v1581_v31  ;;  %565 = vmatpush.msrb.mxu3 %v564_v9  ;;  %v1365_v9 = vand.u32 127, %v32_v62 }
  0x3d   :  { %429 = vmatpush.msrb.mxu1 %v979_v16  ;;  %476 = vmatpush.msrb.mxu2 %v1217_v17  ;;  %v1308_v16 = vand.u32 4294901760, %v72_v51 }
  0x3e   :  { %382 = vmatpush.msrb.mxu0 %v1582_v34  ;;  %571 = vmatpush.msrb.mxu3 %v570_v14  ;;  %v1368_v52 = vadd.s32 128, %v1365_v9  ;;  %v930_v14 = vmov 1.0   ;;  %v931_v34 = vmov 0.0  }
  0x3f   :  { %431 = vmatpush.msrb.mxu1 %v990_v21  ;;  %478 = vmatpush.msrb.mxu2 %v1229_v48  ;;  %v1585_v21 = vand.u32 4294901760, %v1087_v6  ;;  %v1331_v6 = vsub.f32 %v72_v51, %v1308_v16 }
  0x40   :  { %386 = vmatpush.msrb.mxu0 %v1583_v15  ;;  %577 = vmatpush.msrb.mxu3 %v576_v18 }
  0x41   :  { %433 = vmatpush.msrb.mxu1 %v1039_v46  ;;  %480 = vmatpush.msrb.mxu2 %v1241_v2  ;;  %v1587_v46 = vand.u32 4294901760, %v1114_v43 }
  0x42   :  { %390 = vmatpush.msrb.mxu0 %v1584_v53  ;;  %v1590_v53 = vld [vmem:[#allocation11_spill] sm:$0xff] }
  0x43   :  { %435 = vmatpush.msrb.mxu1 %v1044_v49  ;;  %482 = vmatpush.msrb.mxu2 %v1308_v16  ;;  %v1589_v49 = vld [vmem:[#allocation10_spill] sm:$0xff] }
  0x44   :  { %394 = vmatpush.msrb.mxu0 %v1585_v21  ;;  %v1591_v21 = vand.u32 4294901760, %v1590_v53 }
  0x45   :  { %437 = vmatpush.msrb.mxu1 %v1046_v50  ;;  %v71_v50 = vld [vmem:[#allocation4 + $0x90] sm:$0xff] }
  0x46   :  { %398 = vmatpush.msrb.mxu0 %v1586_v56  ;;  %v1328_v4 = vand.u32 4294901760, %v71_v50 }
  0x47   :  { %439 = vmatpush.msrb.mxu1 %v1055_v54  ;;  %v70_v54 = vld [vmem:[#allocation4 + $0x88] sm:$0xff] }
  0x48   :  { %402 = vmatpush.msrb.mxu0 %v1587_v46  ;;  %484 = vmatpush.msrb.mxu2 %v1328_v4  ;;  %v1335_v33 = vand.u32 4294901760, %v70_v54  ;;  %v1338_v43 = vsub.f32 %v71_v50, %v1328_v4 }
  0x49   :  { %441 = vmatpush.msrb.mxu1 %v1062_v57  ;;  %v580_v57 = vand.u32 4294901760, %v1331_v6 }
  0x4a   :  { %406 = vmatpush.msrb.mxu0 %v1588_v61  ;;  %486 = vmatpush.msrb.mxu2 %v1335_v33  ;;  %v586_v1 = vand.u32 4294901760, %v1338_v43  ;;  %v1348_v19 = vsub.f32 %v70_v54, %v1335_v33  ;;  %v1592_v61 = vld [vmem:[#allocation12_spill] sm:$0xff] }
  0x4b   :  { %443 = vmatpush.msrb.mxu1 %v1074_v63  ;;  %v69_v63 = vld [vmem:[#allocation4 + $0x80] sm:$0xff] }
  0x4c   :  { %v1345_v58 = vand.u32 4294901760, %v69_v63  ;;  %v587_v3 = vsub.f32 %v1338_v43, %v586_v1  ;;  %v592_v20 = vand.u32 4294901760, %v1348_v19 }
  0x4d   :  { %445 = vmatpush.msrb.mxu1 %v1089_v10  ;;  %v581_v10 = vsub.f32 %v1331_v6, %v580_v57 }
  0x4e   :  { %488 = vmatpush.msrb.mxu2 %v1345_v58  ;;  %v1356_v55 = vsub.f32 %v69_v63, %v1345_v58  ;;  %v588_v7 = vand.u32 4294901760, %v587_v3  ;;  %v593_v12 = vsub.f32 %v1348_v19, %v592_v20 }
  0x4f   :  { %447 = vmatpush.msrb.mxu1 %v1589_v49  ;;  %v582_v35 = vand.u32 4294901760, %v581_v10  ;;  %v1593_v49 = vand.u32 4294901760, %v1592_v61  ;;  %v1594_v10 = vld [vmem:[#allocation13_spill] sm:$0xff] }
  0x50   :  { %v598_v23 = vand.u32 4294901760, %v1356_v55  ;;  %v594_v8 = vand.u32 4294901760, %v593_v12 }
  0x51   :  { %583 = vmatpush.msrb.mxu3 %v582_v35  ;;  %v1595_v35 = vand.u32 4294901760, %v1594_v10 }
  0x52   :  { %v599_v13 = vsub.f32 %v1356_v55, %v598_v23 }
  0x53   :  { %589 = vmatpush.msrb.mxu3 %v588_v7  ;;  %v1596_v7 = vld [vmem:[#allocation14_spill] sm:$0xff] }
  0x54   :  { %v600_v24 = vand.u32 4294901760, %v599_v13  ;;  %v1597_v12 = vand.u32 4294901760, %v1596_v7  ;;  %v1598_v13 = vand.u32 4294901760, %v1173_v30 }
  0x55   :  { %595 = vmatpush.msrb.mxu3 %v594_v8 }
  0x57   :  { %601 = vmatpush.msrb.mxu3 %v600_v24 }
  0x7a   :  { %v1370_v31 = vpop.permute.xlu0 %36 }
  0x7b   :  { %vm41_vm0 = vcmp.eq.s32.totalorder %v1365_v9, %v1370_v31  ;;  %vm42_vm1 = vcmp.eq.s32.totalorder %v1368_v52, %v1370_v31 }
  0x7c   :  { %854 = vmatmul.msk.f32.vlgmr.msra.gmra.mxu1 %vm41_vm0, %v930_v14  ;;  %v850_v51 = vsel %vm41_vm0, 1.0, %v931_v34  ;;  %v851_v56 = vsel %vm42_vm1, 1.0, %v931_v34 }
  0x7d   :  { %671 = vmatpush.msra.mxu1 %v1108_v41  ;;  %v118_v18 = vsub.f32 %v850_v51, %v850_v51  ;;  %v1399_v63 = vsub.f32 %v851_v56, %v851_v56  ;;  %v1599_v51 = vand.u32 4294901760, %v1183_v25 }
  0x7f   :  { %289 = vmatmul.f32.vlgmr.msra.gmra.mxu2 %v118_v18  ;;  %673 = vmatpush.msra.mxu1 %v1116_v44  ;;  %v119_v15 = vand.u32 4294901760, %v118_v18 }
  0x80   :  { %718 = vmatpush.msra.mxu2 %v1591_v21 }
  0x81   :  { %333 = vmatmul.f32.vlgmr.msra.gmra.mxu3 %v119_v15  ;;  %675 = vmatpush.msra.mxu1 %v1118_v47  ;;  %v120_v46 = vsub.f32 %v118_v18, %v119_v15 }
  0x82   :  { %722 = vmatpush.msra.mxu2 %v1593_v49  ;;  %789 = vmatpush.msra.mxu3 %v1108_v41  ;;  %v1394_v50 = vpop.permute.xlu0 %39 }
  0x83   :  { %vm43_vm2 = vcmp.eq.s32.totalorder %v1365_v9, %v1394_v50  ;;  %677 = vmatpush.msra.mxu1 %v1127_v59  ;;  %v121_v54 = vand.u32 4294901760, %v120_v46  ;;  %vm44_vm3 = vcmp.eq.s32.totalorder %v1368_v52, %v1394_v50 }
  0x84   :  { %855 = vmatmul.msk.f32.gmra.mxu1 %vm43_vm2, %v930_v14  ;;  %726 = vmatpush.msra.mxu2 %v1595_v35  ;;  %v852_v41 = vsel %vm43_vm2, 1.0, %v931_v34 }
  0x85   :  { %791 = vmatpush.msra.mxu3 %v1116_v44  ;;  %122 = vmatmul.f32.vlgmr.msra.gmra.mxu0 %v121_v54  ;;  %v126_v3 = vsub.f32 %v852_v41, %v852_v41  ;;  %v491_v44 = vand.u32 4294901760, %v1399_v63 }
  0x86   :  { %679 = vmatpush.msra.mxu1 %v1146_v60  ;;  %613 = vmatpush.msra.mxu0 %v1590_v53 }
  0x87   :  { %730 = vmatpush.msra.mxu2 %v1597_v12  ;;  %793 = vmatpush.msra.mxu3 %v1118_v47  ;;  %v127_v8 = vand.u32 4294901760, %v126_v3  ;;  %v853_v47 = vsel %vm44_vm3, 1.0, %v931_v34  ;;  %v492_v18 = vsub.f32 %v1399_v63, %v491_v44 }
  0x88   :  { %294 = vmatmul.f32.gmra.mxu2 %v126_v3  ;;  %681 = vmatpush.msra.mxu1 %v1151_v29 }
  0x89   :  { %616 = vmatpush.msra.mxu0 %v1592_v61  ;;  %734 = vmatpush.msra.mxu2 %v1598_v13  ;;  %v128_v24 = vsub.f32 %v126_v3, %v127_v8 }
  0x8a   :  { %795 = vmatpush.msra.mxu3 %v1127_v59  ;;  %683 = vmatpush.msra.mxu1 %v1175_v28  ;;  %v498_v59 = vsub.f32 %v853_v47, %v853_v47 }
  0x8b   :  { %339 = vmatmul.f32.gmra.mxu3 %v127_v8  ;;  %619 = vmatpush.msra.mxu0 %v1594_v10  ;;  %v129_v62 = vand.u32 4294901760, %v128_v24 }
  0x8c   :  { %738 = vmatpush.msra.mxu2 %v1599_v51  ;;  %797 = vmatpush.msra.mxu3 %v1146_v60  ;;  %v493_v60 = vand.u32 4294901760, %v492_v18  ;;  %v499_v34 = vand.u32 4294901760, %v498_v59 }
  0x8d   :  { %685 = vmatpush.msra.mxu1 %v1190_v26  ;;  %622 = vmatpush.msra.mxu0 %v1596_v7 }
  0x8e   :  { %858 = vmatmul.msk.f32.vlgmr.msrb.gmra.mxu1 %vm41_vm0, %v930_v14  ;;  %742 = vmatpush.msra.mxu2 %v544_v36 }
  0x8f   :  { %799 = vmatpush.msra.mxu3 %v1151_v29  ;;  %130 = vmatmul.f32.gmra.mxu0 %v129_v62 }
  0x90   :  { %687 = vmatpush.msra.mxu1 %v1205_v45  ;;  %625 = vmatpush.msra.mxu0 %v1173_v30 }
  0x91   :  { %746 = vmatpush.msra.mxu2 %v550_v37  ;;  %801 = vmatpush.msra.mxu3 %v1175_v28  ;;  %v500_v28 = vsub.f32 %v498_v59, %v499_v34 }
  0x92   :  { %494 = vmatmul.f32.vlgmr.msrb.gmra.mxu2 %v493_v60  ;;  %689 = vmatpush.msra.mxu1 %v1217_v17 }
  0x93   :  { %628 = vmatpush.msra.mxu0 %v1183_v25  ;;  %750 = vmatpush.msra.mxu2 %v556_v22 }
  0x94   :  { %803 = vmatpush.msra.mxu3 %v1190_v26  ;;  %691 = vmatpush.msra.mxu1 %v1229_v48  ;;  %v501_v26 = vand.u32 4294901760, %v500_v28 }
  0x95   :  { %860 = vmatmul.msk.f32.vlgmr.msrb.gmra.mxu3 %vm42_vm1, %v930_v14  ;;  %631 = vmatpush.msra.mxu0 %v1203_v27 }
  0x96   :  { %754 = vmatpush.msra.mxu2 %v562_v39  ;;  %805 = vmatpush.msra.mxu3 %v1205_v45 }
  0x97   :  { %693 = vmatpush.msra.mxu1 %v1241_v2  ;;  %634 = vmatpush.msra.mxu0 %v1215_v32 }
  0x98   :  { %859 = vmatmul.msk.f32.gmra.mxu1 %vm43_vm2, %v930_v14  ;;  %758 = vmatpush.msra.mxu2 %v568_v5 }
  0x99   :  { %807 = vmatpush.msra.mxu3 %v1217_v17  ;;  %856 = vmatmul.msk.f32.vlgmr.msrb.gmra.mxu0 %vm41_vm0, %v930_v14 }
  0x9a   :  { %695 = vmatpush.msra.mxu1 %v1308_v16  ;;  %637 = vmatpush.msra.mxu0 %v1227_v42 }
  0x9b   :  { %762 = vmatpush.msra.mxu2 %v574_v40  ;;  %809 = vmatpush.msra.mxu3 %v1229_v48 }
  0x9c   :  { %502 = vmatmul.f32.gmra.mxu2 %v501_v26  ;;  %697 = vmatpush.msra.mxu1 %v1328_v4 }
  0x9d   :  { %640 = vmatpush.msra.mxu0 %v1239_v0  ;;  %766 = vmatpush.msra.mxu2 %v580_v57 }
  0x9e   :  { %811 = vmatpush.msra.mxu3 %v1241_v2  ;;  %699 = vmatpush.msra.mxu1 %v1335_v33 }
  0x9f   :  { %861 = vmatmul.msk.f32.gmra.mxu3 %vm44_vm3, %v930_v14  ;;  %643 = vmatpush.msra.mxu0 %v1251_v38 }
  0xa0   :  { %770 = vmatpush.msra.mxu2 %v586_v1  ;;  %813 = vmatpush.msra.mxu3 %v1308_v16 }
  0xa1   :  { %701 = vmatpush.msra.mxu1 %v1345_v58  ;;  %646 = vmatpush.msra.mxu0 %v1262_v11 }
  0xa2   :  { %705 = vmatmul.f32.vlgmr.msra.gmra.mxu1 %v491_v44  ;;  %774 = vmatpush.msra.mxu2 %v592_v20 }
  0xa3   :  { %815 = vmatpush.msra.mxu3 %v1328_v4  ;;  %857 = vmatmul.msk.f32.gmra.mxu0 %vm43_vm2, %v930_v14 }
  0xa4   :  { %649 = vmatpush.msra.mxu0 %v1331_v6  ;;  %778 = vmatpush.msra.mxu2 %v598_v23 }
  0xa5   :  { %817 = vmatpush.msra.mxu3 %v1335_v33  ;;  %862 = vmatmul.msk.f32.vlgmr.msra.gmra.mxu2 %vm42_vm1, %v930_v14 }
  0xa6   :  { %652 = vmatpush.msra.mxu0 %v1338_v43 }
  0xa7   :  { %819 = vmatpush.msra.mxu3 %v1345_v58 }
  0xa8   :  { %864 = vmatmul.msk.f32.vlgmr.msra.gmra.mxu3 %vm42_vm1, %v930_v14  ;;  %655 = vmatpush.msra.mxu0 %v1348_v19 }
  0xaa   :  { %658 = vmatpush.msra.mxu0 %v1356_v55  ;;  %711 = vmatmul.f32.gmra.mxu1 %v499_v34 }
  0xab   :  { %661 = vmatmul.f32.vlgmr.msra.gmra.mxu0 %v1399_v63 }
  0xad   :  { %863 = vmatmul.msk.f32.gmra.mxu2 %vm44_vm3, %v930_v14 }
  0xb0   :  { %865 = vmatmul.msk.f32.gmra.mxu3 %vm44_vm3, %v930_v14 }
  0xb3   :  { %666 = vmatmul.f32.gmra.mxu0 %v498_v59 }
  0xf9   :  { %v232_v27 = vpop.f32.mrf.mxu1 }
 0x101   :  { %v236_v17 = vpop.f32.mrf.mxu1 }
 0x102   :  { %v123_v30 = vpop.f32.mrf.mxu0  ;;  %v290_v45 = vpop.f32.mrf.mxu2 }
 0x103   :  { %v233_v36 = vadd.f32 %v232_v27, %v123_v30 }
 0x104   :  { %v334_v48 = vpop.f32.mrf.mxu3 }
 0x105   :  { %v291_v37 = vadd.f32 %v290_v45, %v233_v36 }
 0x107   :  { %v335_v38 = vadd.f32 %v334_v48, %v291_v37 }
 0x10b   :  { %v295_v25 = vpop.f32.mrf.mxu2  ;;  %v450_v42 = vpop.f32.mrf.mxu1 }
 0x10c   :  { %v131_v29 = vpop.f32.mrf.mxu0 }
 0x10d   :  { %v237_v39 = vadd.f32 %v236_v17, %v131_v29 }
 0x10e   :  { %v340_v32 = vpop.f32.mrf.mxu3 }
 0x10f   :  { %v296_v5 = vadd.f32 %v295_v25, %v237_v39 }
 0x111   :  { %v341_v57 = vadd.f32 %v340_v32, %v296_v5 }
 0x115   :  { %v495_v2 = vpop.f32.mrf.mxu2  ;;  %v454_v40 = vpop.f32.mrf.mxu1 }
 0x116   :  { %v409_v0 = vpop.f32.mrf.mxu0 }
 0x117   :  { %v410_v11 = vadd.f32 %v409_v0, %v335_v38 }
 0x118   :  { %v604_v22 = vpop.f32.mrf.mxu3 }
 0x119   :  { %v451_v16 = vadd.f32 %v450_v42, %v410_v11 }
 0x11b   :  { %v496_v43 = vadd.f32 %v495_v2, %v451_v16 }
 0x11d   :  { %v605_v58 = vadd.f32 %v604_v22, %v496_v43 }
 0x11f   :  { %v503_v6 = vpop.f32.mrf.mxu2  ;;  %v706_v20 = vpop.f32.mrf.mxu1 }
 0x120   :  { %v413_v4 = vpop.f32.mrf.mxu0 }
 0x121   :  { %v414_v1 = vadd.f32 %v413_v4, %v341_v57 }
 0x122   :  { %v608_v33 = vpop.f32.mrf.mxu3 }
 0x123   :  { %v455_v19 = vadd.f32 %v454_v40, %v414_v1 }
 0x125   :  { %v504_v52 = vadd.f32 %v503_v6, %v455_v19 }
 0x127   :  { %v609_v53 = vadd.f32 %v608_v33, %v504_v52  ;;  %v712_v61 = vpop.f32.mrf.mxu1 }
 0x128   :  { %v662_v55 = vpop.f32.mrf.mxu0  ;;  %v781_v9 = vpop.f32.mrf.mxu2 }
 0x129   :  { %v663_v23 = vadd.f32 %v662_v55, %v605_v58 }
 0x12b   :  { %v707_v31 = vadd.f32 %v706_v20, %v663_v23  ;;  %v822_v14 = vpop.f32.mrf.mxu3 }
 0x12d   :  { %v782_v15 = vadd.f32 %v781_v9, %v707_v31 }
 0x12f   :  { %v823_v21 = vadd.f32 %v822_v14, %v782_v15 }
 0x130   :  { %v667_v56 = vpop.f32.mrf.mxu0  ;;  %v785_v50 = vpop.f32.mrf.mxu2 }
 0x131   :  { %829 = vst [vmem:[#allocation7] sm:$0xff] %v823_v21  ;;  %v668_v46 = vadd.f32 %v667_v56, %v609_v53 }
 0x133   :  { %v713_v49 = vadd.f32 %v712_v61, %v668_v46  ;;  %v826_v63 = vpop.f32.mrf.mxu3 }
 0x135   :  { %v786_v54 = vadd.f32 %v785_v50, %v713_v49 }
 0x137   :  { %v827_v10 = vadd.f32 %v826_v63, %v786_v54 }
 0x139   :  { %830 = vst [vmem:[#allocation7 + $0x8] sm:$0xff] %v827_v10 }
 0x13a   :  { %843 = dma.vmem_to_hbm [thread:$0]  %s836_s21, 256, %s838_s24, [#allocation6], %s927_s0, %s927_s0, %s928_s17  }
 0x13b   :  { %924 = dma.done.wait [#allocation6], 256  }
 0x13c   :  { %925 = vsyncadd [#allocation6], 4294967040 }
 0x13d   :  { %848 = vsyncpa [#allocation5], 1 }
 0x13e   :  { %849 = vsyncpa [#allocation6], 1 }

// kernel: tpu_custom_call.1
= control target key start
LH: loop header
LB: loop body
LE: loop exit
PB: predicated region body
PF: predicated region fallthrough
CT: control target
= control target key end

     0   :  { %9 = vsyncpa [#allocation5], 0  ;;  %s1533_s0 = inlined_call_operand.<no memory space> [shape: s32[1], index: 0, kind: input, shape index: {}]   ;;  %s1534_s1 = inlined_call_operand.vmem [shape: s32[16,1], index: 1, kind: input, shape index: {}]   ;;  %s1535_s2 = inlined_call_operand.hbm [shape: f32[256,128], index: 2, kind: input, shape index: {}]   ;;  %s1536_s3 = inlined_call_operand.hbm [shape: f32[16,128], index: 3, kind: output, shape index: {}]  }
   0x1   :  { %10 = vsyncpa [#allocation6], 0  ;;  %s17_s14 = sshll.u32 %s1535_s2, 4  ;;  %s926_s15 = smov [#allocation4]   ;;  %s18_s14 = int_to_ptr.hbm [resolvable:$true] %s17_s14 }
   0x2   :  { %s19_s16 = sshll.u32 %s926_s15, 4  ;;  %s927_s0 = smov 128   ;;  %s20_s16 = int_to_ptr.vmem [resolvable:$true] %s19_s16 }
   0x3   :  { %s928_s17 = smov 8  }
   0x4   :  { %25 = dma.hbm_to_vmem [thread:$0]  %s18_s14, 4096, %s20_s16, [#allocation5], %s927_s0, %s927_s0, %s928_s17  }
   0x5   :  { %922 = dma.done.wait [#allocation5], 4096  }
   0x6   :  { %923 = vsyncadd [#allocation5], 4294963200  ;;  %v929_v0 = vmov 0   ;;  %v30_v1 = vld [vmem:[%s1534_s1] sm:$0xff]  ;;  %v68_v2 = vld [vmem:[#allocation4 + $0x78] sm:$0xff]  ;;  %s837_s24 = sshll.u32 %s1536_s3, 4  ;;  %s838_s24 = int_to_ptr.hbm [resolvable:$true] %s837_s24 }
   0x7   :  { %873 = vset.pattern.permute.xlu0 %v929_v0  ;;  %v962_v3 = vand.u32 4294901760, %v68_v2  ;;  %v67_v4 = vld [vmem:[#allocation4 + $0x70] sm:$0xff]  ;;  %v66_v5 = vld [vmem:[#allocation4 + $0x68] sm:$0xff]  ;;  %v65_v6 = vld [vmem:[#allocation4 + $0x60] sm:$0xff] }
   0x8   :  { %36 = vperm.xlu0 %873, %v30_v1   ;;  %v964_v7 = vand.u32 4294901760, %v67_v4  ;;  %v966_v8 = vand.u32 4294901760, %v66_v5  ;;  %v968_v9 = vand.u32 4294901760, %v65_v6  ;;  %v64_v10 = vld [vmem:[#allocation4 + $0x58] sm:$0xff]  ;;  %v63_v11 = vld [vmem:[#allocation4 + $0x50] sm:$0xff]  ;;  %v62_v12 = vld [vmem:[#allocation4 + $0x48] sm:$0xff] }
   0x9   :  { %v971_v13 = vsub.f32 %v68_v2, %v962_v3  ;;  %299 = vmatpush.msra.mxu3 %v962_v3  ;;  %v974_v14 = vand.u32 4294901760, %v64_v10  ;;  %86 = vmatpush.msra.mxu0 %v962_v3  ;;  %v977_v15 = vand.u32 4294901760, %v63_v11  ;;  %v979_v16 = vand.u32 4294901760, %v62_v12  ;;  %v61_v17 = vld [vmem:[#allocation4 + $0x40] sm:$0xff]  ;;  %v31_v25 = vld [vmem:[%s1534_s1 + $0x8] sm:$0xff]  ;;  %v60_v35 = vld [vmem:[#allocation4 + $0x38] sm:$0xff] }
   0xa   :  { %v982_v18 = vsub.f32 %v67_v4, %v964_v7  ;;  %v985_v19 = vsub.f32 %v66_v5, %v966_v8  ;;  %v988_v20 = vsub.f32 %v65_v6, %v968_v9  ;;  %v990_v21 = vand.u32 4294901760, %v61_v17  ;;  %v59_v39 = vld [vmem:[#allocation4 + $0x30] sm:$0xff]  ;;  %v58_v40 = vld [vmem:[#allocation4 + $0x28] sm:$0xff]  ;;  %v57_v42 = vld [vmem:[#allocation4 + $0x20] sm:$0xff]  ;;  %s932_s1 = smov [#allocation7]  }
   0xb   :  { %v1553_v22 = vand.u32 4294901760, %v971_v13  ;;  %241 = vmatpush.msra.mxu2 %v971_v13  ;;  %301 = vmatpush.msra.mxu3 %v964_v7  ;;  %v996_v23 = vsub.f32 %v64_v10, %v974_v14  ;;  %v999_v24 = vsub.f32 %v63_v11, %v977_v15  ;;  %v1015_v31 = vsub.f32 %v62_v12, %v979_v16  ;;  %v56_v47 = vld [vmem:[#allocation4 + $0x18] sm:$0xff]  ;;  %v55_v55 = vld [vmem:[#allocation4 + $0x10] sm:$0xff]  ;;  %v54_v62 = vld [vmem:[#allocation4 + $0x8] sm:$0xff]  ;;  %s835_s21 = sshll.u32 %s932_s1, 4  ;;  %s836_s21 = int_to_ptr.vmem [resolvable:$true] %s835_s21 }
   0xc   :  { %v1550_v26 = vand.u32 4294901760, %v982_v18  ;;  %v1549_v27 = vand.u32 4294901760, %v985_v19  ;;  %v1546_v28 = vand.u32 4294901760, %v988_v20  ;;  %88 = vmatpush.msra.mxu0 %v964_v7  ;;  %v1025_v34 = vsub.f32 %v61_v17, %v990_v21  ;;  %v53_v5 = vld [vmem:[#allocation4] sm:$0xff]  ;;  %v84_v11 = vld [vmem:[#allocation4 + $0xf8] sm:$0xff] }
   0xd   :  { %v137_v29 = vsub.f32 %v971_v13, %v1553_v22  ;;  %244 = vmatpush.msra.mxu2 %v982_v18  ;;  %v1545_v30 = vand.u32 4294901760, %v996_v23  ;;  %303 = vmatpush.msra.mxu3 %v966_v8  ;;  %v1544_v38 = vand.u32 4294901760, %v999_v24  ;;  %v1542_v45 = vand.u32 4294901760, %v1015_v31 }
   0xe   :  { %v143_v32 = vsub.f32 %v982_v18, %v1550_v26  ;;  %v149_v33 = vsub.f32 %v985_v19, %v1549_v27  ;;  %90 = vmatpush.msra.mxu0 %v966_v8  ;;  %v155_v37 = vsub.f32 %v988_v20, %v1546_v28  ;;  %v1039_v46 = vand.u32 4294901760, %v60_v35 }
   0xf   :  { %v138_v36 = vand.u32 4294901760, %v137_v29  ;;  %247 = vmatpush.msra.mxu2 %v985_v19  ;;  %305 = vmatpush.msra.mxu3 %v968_v9  ;;  %v161_v44 = vsub.f32 %v996_v23, %v1545_v30  ;;  %v1541_v48 = vand.u32 4294901760, %v1025_v34  ;;  %v1044_v49 = vand.u32 4294901760, %v59_v39  ;;  %v83_v29 = vld [vmem:[#allocation4 + $0xf0] sm:$0xff] }
  0x10   :  { %39 = vperm.xlu0 %873, %v31_v25   ;;  %v144_v41 = vand.u32 4294901760, %v143_v32  ;;  %92 = vmatpush.msra.mxu0 %v968_v9  ;;  %v150_v43 = vand.u32 4294901760, %v149_v33  ;;  %v1046_v50 = vand.u32 4294901760, %v58_v40  ;;  %v156_v51 = vand.u32 4294901760, %v155_v37  ;;  %v82_v32 = vld [vmem:[#allocation4 + $0xe8] sm:$0xff] }
  0x11   :  { %139 = vmatpush.msra.mxu1 %v138_v36  ;;  %250 = vmatpush.msra.mxu2 %v988_v20  ;;  %v167_v52 = vsub.f32 %v999_v24, %v1544_v38  ;;  %v1053_v53 = vsub.f32 %v60_v35, %v1039_v46  ;;  %v1055_v54 = vand.u32 4294901760, %v57_v42  ;;  %v1059_v56 = vsub.f32 %v59_v39, %v1044_v49  ;;  %v81_v36 = vld [vmem:[#allocation4 + $0xe0] sm:$0xff] }
  0x12   :  { %307 = vmatpush.msra.mxu3 %v974_v14  ;;  %94 = vmatpush.msra.mxu0 %v974_v14  ;;  %v1062_v57 = vand.u32 4294901760, %v56_v47  ;;  %v162_v58 = vand.u32 4294901760, %v161_v44  ;;  %v173_v59 = vsub.f32 %v1015_v31, %v1542_v45  ;;  %v1070_v61 = vsub.f32 %v58_v40, %v1046_v50 }
  0x13   :  { %145 = vmatpush.msra.mxu1 %v144_v41  ;;  %253 = vmatpush.msra.mxu2 %v996_v23  ;;  %v1539_v60 = vand.u32 4294901760, %v1053_v53  ;;  %v1074_v63 = vand.u32 4294901760, %v55_v55  ;;  %v168_v0 = vand.u32 4294901760, %v167_v52  ;;  %v179_v1 = vsub.f32 %v1025_v34, %v1541_v48 }
  0x14   :  { %309 = vmatpush.msra.mxu3 %v977_v15  ;;  %96 = vmatpush.msra.mxu0 %v977_v15  ;;  %v1538_v2 = vand.u32 4294901760, %v1059_v56  ;;  %v1082_v4 = vsub.f32 %v57_v42, %v1055_v54  ;;  %v1087_v6 = vsub.f32 %v56_v47, %v1062_v57  ;;  %v1089_v10 = vand.u32 4294901760, %v54_v62 }
  0x15   :  { %151 = vmatpush.msra.mxu1 %v150_v43  ;;  %256 = vmatpush.msra.mxu2 %v999_v24  ;;  %v174_v12 = vand.u32 4294901760, %v173_v59  ;;  %v185_v17 = vsub.f32 %v1053_v53, %v1539_v60  ;;  %v1537_v25 = vand.u32 4294901760, %v1070_v61  ;;  %v1099_v33 = vsub.f32 %v55_v55, %v1074_v63 }
  0x16   :  { %311 = vmatpush.msra.mxu3 %v979_v16  ;;  %98 = vmatpush.msra.mxu0 %v979_v16  ;;  %v1101_v35 = vand.u32 4294901760, %v53_v5  ;;  %v180_v37 = vand.u32 4294901760, %v179_v1  ;;  %v191_v39 = vsub.f32 %v1059_v56, %v1538_v2  ;;  %v1540_v40 = vand.u32 4294901760, %v1082_v4 }
  0x17   :  { %157 = vmatpush.msra.mxu1 %v156_v51  ;;  %259 = vmatpush.msra.mxu2 %v1015_v31  ;;  %v1108_v41 = vand.u32 4294901760, %v84_v11  ;;  %v1543_v42 = vand.u32 4294901760, %v1087_v6  ;;  %v1114_v43 = vsub.f32 %v54_v62, %v1089_v10  ;;  %v1116_v44 = vand.u32 4294901760, %v83_v29  ;;  %v80_v51 = vld [vmem:[#allocation4 + $0xd8] sm:$0xff]  ;;  %v79_v62 = vld [vmem:[#allocation4 + $0xd0] sm:$0xff] }
  0x18   :  { %313 = vmatpush.msra.mxu3 %v990_v21  ;;  %100 = vmatpush.msra.mxu0 %v990_v21  ;;  %1565 = vst [vmem:[#allocation10_spill] sm:$0xff] %v1101_v35  ;;  %v1118_v47 = vand.u32 4294901760, %v82_v32  ;;  %v186_v52 = vand.u32 4294901760, %v185_v17  ;;  %v197_v55 = vsub.f32 %v1070_v61, %v1537_v25  ;;  %v1127_v59 = vand.u32 4294901760, %v81_v36 }
  0x19   :  { %163 = vmatpush.msra.mxu1 %v162_v58  ;;  %262 = vmatpush.msra.mxu2 %v1025_v34  ;;  %v1125_v58 = vsub.f32 %v84_v11, %v1108_v41  ;;  %v1133_v1 = vsub.f32 %v53_v5, %v1101_v35  ;;  %v192_v11 = vand.u32 4294901760, %v191_v39  ;;  %v203_v25 = vsub.f32 %v1082_v4, %v1540_v40 }
  0x1a   :  { %315 = vmatpush.msra.mxu3 %v1039_v46  ;;  %102 = vmatpush.msra.mxu0 %v1039_v46  ;;  %v1139_v17 = vsub.f32 %v82_v32, %v1118_v47  ;;  %v1146_v60 = vand.u32 4294901760, %v80_v51  ;;  %v78_v32 = vld [vmem:[#allocation4 + $0xc8] sm:$0xff]  ;;  %v209_v39 = vsub.f32 %v1087_v6, %v1543_v42  ;;  %v1552_v40 = vand.u32 4294901760, %v1114_v43  ;;  %v77_v42 = vld [vmem:[#allocation4 + $0xc0] sm:$0xff] }
  0x1b   :  { %169 = vmatpush.msra.mxu1 %v168_v0  ;;  %265 = vmatpush.msra.mxu2 %v1053_v53  ;;  %1566 = vst [vmem:[#allocation11_spill] sm:$0xff] %v1125_v58  ;;  %v1548_v0 = vand.u32 4294901760, %v1099_v33  ;;  %v1547_v2 = vand.u32 4294901760, %v1125_v58  ;;  %v1159_v48 = vsub.f32 %v81_v36, %v1127_v59  ;;  %v1554_v45 = vand.u32 4294901760, %v1133_v1 }
  0x1c   :  { %317 = vmatpush.msra.mxu3 %v1044_v49  ;;  %104 = vmatpush.msra.mxu0 %v1044_v49  ;;  %1568 = vst [vmem:[#allocation13_spill] sm:$0xff] %v1139_v17  ;;  %v204_v38 = vand.u32 4294901760, %v203_v25  ;;  %v1173_v30 = vsub.f32 %v80_v51, %v1146_v60  ;;  %v1175_v28 = vand.u32 4294901760, %v78_v32  ;;  %v221_v51 = vsub.f32 %v1114_v43, %v1552_v40 }
  0x1d   :  { %175 = vmatpush.msra.mxu1 %v174_v12  ;;  %268 = vmatpush.msra.mxu2 %v1059_v56  ;;  %v1136_v12 = vsub.f32 %v83_v29, %v1116_v44  ;;  %v1151_v29 = vand.u32 4294901760, %v79_v62  ;;  %1569 = vst [vmem:[#allocation14_spill] sm:$0xff] %v1159_v48  ;;  %v215_v36 = vsub.f32 %v1099_v33, %v1548_v0  ;;  %v210_v0 = vand.u32 4294901760, %v209_v39  ;;  %v75_v39 = vld [vmem:[#allocation4 + $0xb0] sm:$0xff] }
  0x1e   :  { %319 = vmatpush.msra.mxu3 %v1046_v50  ;;  %106 = vmatpush.msra.mxu0 %v1046_v50  ;;  %v1190_v26 = vand.u32 4294901760, %v77_v42  ;;  %v1203_v27 = vsub.f32 %v78_v32, %v1175_v28 }
  0x1f   :  { %1567 = vst [vmem:[#allocation12_spill] sm:$0xff] %v1136_v12  ;;  %181 = vmatpush.msra.mxu1 %v180_v37  ;;  %271 = vmatpush.msra.mxu2 %v1070_v61  ;;  %v1551_v5 = vand.u32 4294901760, %v1136_v12  ;;  %v198_v37 = vand.u32 4294901760, %v197_v55  ;;  %v1557_v55 = vand.u32 4294901760, %v1139_v17  ;;  %v1183_v25 = vsub.f32 %v79_v62, %v1151_v29 }
  0x20   :  { %321 = vmatpush.msra.mxu3 %v1055_v54  ;;  %108 = vmatpush.msra.mxu0 %v1055_v54  ;;  %v216_v40 = vand.u32 4294901760, %v215_v36  ;;  %v1570_v36 = vand.u32 4294901760, %v1159_v48  ;;  %v1215_v32 = vsub.f32 %v77_v42, %v1190_v26 }
  0x21   :  { %187 = vmatpush.msra.mxu1 %v186_v52  ;;  %274 = vmatpush.msra.mxu2 %v1082_v4  ;;  %v509_v52 = vsub.f32 %v1125_v58, %v1547_v2  ;;  %v76_v2 = vld [vmem:[#allocation4 + $0xb8] sm:$0xff] }
  0x22   :  { %323 = vmatpush.msra.mxu3 %v1062_v57  ;;  %110 = vmatpush.msra.mxu0 %v1062_v57  ;;  %v527_v22 = vsub.f32 %v1159_v48, %v1570_v36  ;;  %v544_v36 = vand.u32 4294901760, %v1203_v27 }
  0x23   :  { %193 = vmatpush.msra.mxu1 %v192_v11  ;;  %277 = vmatpush.msra.mxu2 %v1087_v6  ;;  %v515_v11 = vsub.f32 %v1136_v12, %v1551_v5  ;;  %v227_v5 = vsub.f32 %v1133_v1, %v1554_v45  ;;  %v510_v62 = vand.u32 4294901760, %v509_v52  ;;  %v1205_v45 = vand.u32 4294901760, %v76_v2  ;;  %v73_v12 = vld [vmem:[#allocation4 + $0xa0] sm:$0xff] }
  0x24   :  { %325 = vmatpush.msra.mxu3 %v1074_v63  ;;  %112 = vmatpush.msra.mxu0 %v1074_v63 }
  0x25   :  { %199 = vmatpush.msra.mxu1 %v198_v37  ;;  %280 = vmatpush.msra.mxu2 %v1099_v33  ;;  %v521_v37 = vsub.f32 %v1139_v17, %v1557_v55  ;;  %v516_v52 = vand.u32 4294901760, %v515_v11  ;;  %v74_v55 = vld [vmem:[#allocation4 + $0xa8] sm:$0xff]  ;;  %v1217_v17 = vand.u32 4294901760, %v75_v39  ;;  %v228_v58 = vand.u32 4294901760, %v227_v5 }
  0x26   :  { %327 = vmatpush.msra.mxu3 %v1089_v10  ;;  %114 = vmatpush.msra.mxu0 %v1089_v10  ;;  %v1227_v42 = vsub.f32 %v76_v2, %v1205_v45  ;;  %v1229_v48 = vand.u32 4294901760, %v74_v55  ;;  %v1573_v5 = vand.u32 4294901760, %v1183_v25  ;;  %v1241_v2 = vand.u32 4294901760, %v73_v12 }
  0x27   :  { %205 = vmatpush.msra.mxu1 %v204_v38  ;;  %283 = vmatpush.msra.mxu2 %v1114_v43  ;;  %v222_v38 = vand.u32 4294901760, %v221_v51  ;;  %v522_v11 = vand.u32 4294901760, %v521_v37  ;;  %v1572_v51 = vand.u32 4294901760, %v1173_v30  ;;  %v550_v37 = vand.u32 4294901760, %v1215_v32 }
  0x28   :  { %329 = vmatpush.msra.mxu3 %v1101_v35  ;;  %116 = vmatpush.msra.mxu0 %v1101_v35 }
  0x29   :  { %211 = vmatpush.msra.mxu1 %v210_v0  ;;  %286 = vmatpush.msra.mxu2 %v1133_v1  ;;  %v1571_v0 = vand.u32 4294901760, %v971_v13  ;;  %v533_v35 = vsub.f32 %v1173_v30, %v1572_v51  ;;  %v1574_v13 = vand.u32 4294901760, %v982_v18  ;;  %v545_v18 = vsub.f32 %v1203_v27, %v544_v36 }
  0x2a   :  { %511 = vmatpush.msrb.mxu3 %v510_v62  ;;  %v528_v62 = vand.u32 4294901760, %v527_v22  ;;  %v556_v22 = vand.u32 4294901760, %v1227_v42 }
  0x2b   :  { %458 = vmatpush.msrb.mxu2 %v1108_v41  ;;  %217 = vmatpush.msra.mxu1 %v216_v40  ;;  %v539_v40 = vsub.f32 %v1183_v25, %v1573_v5  ;;  %v534_v51 = vand.u32 4294901760, %v533_v35  ;;  %v551_v35 = vsub.f32 %v1215_v32, %v550_v37 }
  0x2c   :  { %346 = vmatpush.msrb.mxu0 %v1571_v0  ;;  %517 = vmatpush.msrb.mxu3 %v516_v52  ;;  %v1239_v0 = vsub.f32 %v75_v39, %v1217_v17  ;;  %v1575_v52 = vand.u32 4294901760, %v985_v19 }
  0x2d   :  { %460 = vmatpush.msrb.mxu2 %v1116_v44  ;;  %223 = vmatpush.msra.mxu1 %v222_v38  ;;  %v1251_v38 = vsub.f32 %v74_v55, %v1229_v48  ;;  %v540_v19 = vand.u32 4294901760, %v539_v40  ;;  %v557_v55 = vsub.f32 %v1227_v42, %v556_v22 }
  0x2e   :  { %350 = vmatpush.msrb.mxu0 %v1574_v13  ;;  %523 = vmatpush.msrb.mxu3 %v522_v11  ;;  %v562_v39 = vand.u32 4294901760, %v1239_v0  ;;  %v1262_v11 = vsub.f32 %v73_v12, %v1241_v2  ;;  %v552_v12 = vand.u32 4294901760, %v551_v35 }
  0x2f   :  { %462 = vmatpush.msrb.mxu2 %v1118_v47  ;;  %229 = vmatpush.msra.mxu1 %v228_v58  ;;  %v1576_v58 = vand.u32 4294901760, %v988_v20  ;;  %v546_v20 = vand.u32 4294901760, %v545_v18  ;;  %v568_v5 = vand.u32 4294901760, %v1251_v38  ;;  %v558_v13 = vand.u32 4294901760, %v557_v55 }
  0x30   :  { %354 = vmatpush.msrb.mxu0 %v1575_v52  ;;  %529 = vmatpush.msrb.mxu3 %v528_v62  ;;  %v574_v40 = vand.u32 4294901760, %v1262_v11  ;;  %v1580_v62 = vand.u32 4294901760, %v1025_v34  ;;  %v1582_v34 = vand.u32 4294901760, %v1059_v56  ;;  %v1586_v56 = vand.u32 4294901760, %v1099_v33 }
  0x31   :  { %417 = vmatpush.msrb.mxu1 %v962_v3  ;;  %464 = vmatpush.msrb.mxu2 %v1127_v59  ;;  %v1577_v3 = vand.u32 4294901760, %v996_v23  ;;  %v563_v23 = vsub.f32 %v1239_v0, %v562_v39 }
  0x32   :  { %358 = vmatpush.msrb.mxu0 %v1576_v58  ;;  %535 = vmatpush.msrb.mxu3 %v534_v51  ;;  %v575_v52 = vsub.f32 %v1262_v11, %v574_v40  ;;  %v72_v51 = vld [vmem:[#allocation4 + $0x98] sm:$0xff] }
  0x33   :  { %419 = vmatpush.msrb.mxu1 %v964_v7  ;;  %466 = vmatpush.msrb.mxu2 %v1146_v60  ;;  %v1578_v7 = vand.u32 4294901760, %v999_v24  ;;  %v569_v24 = vsub.f32 %v1251_v38, %v568_v5 }
  0x34   :  { %362 = vmatpush.msrb.mxu0 %v1577_v3  ;;  %541 = vmatpush.msrb.mxu3 %v540_v19  ;;  %v576_v18 = vand.u32 4294901760, %v575_v52 }
  0x35   :  { %421 = vmatpush.msrb.mxu1 %v966_v8  ;;  %468 = vmatpush.msrb.mxu2 %v1151_v29  ;;  %v1579_v8 = vand.u32 4294901760, %v1015_v31  ;;  %v1581_v31 = vand.u32 4294901760, %v1053_v53  ;;  %v1584_v53 = vand.u32 4294901760, %v1082_v4 }
  0x36   :  { %366 = vmatpush.msrb.mxu0 %v1578_v7  ;;  %547 = vmatpush.msrb.mxu3 %v546_v20 }
  0x37   :  { %423 = vmatpush.msrb.mxu1 %v968_v9  ;;  %470 = vmatpush.msrb.mxu2 %v1175_v28  ;;  %v564_v9 = vand.u32 4294901760, %v563_v23 }
  0x38   :  { %370 = vmatpush.msrb.mxu0 %v1579_v8  ;;  %553 = vmatpush.msrb.mxu3 %v552_v12 }
  0x39   :  { %425 = vmatpush.msrb.mxu1 %v974_v14  ;;  %472 = vmatpush.msrb.mxu2 %v1190_v26  ;;  %v570_v14 = vand.u32 4294901760, %v569_v24 }
  0x3a   :  { %374 = vmatpush.msrb.mxu0 %v1580_v62  ;;  %559 = vmatpush.msrb.mxu3 %v558_v13  ;;  %v32_v62 = vlaneseq }
  0x3b   :  { %427 = vmatpush.msrb.mxu1 %v977_v15  ;;  %474 = vmatpush.msrb.mxu2 %v1205_v45  ;;  %v1583_v15 = vand.u32 4294901760, %v1070_v61  ;;  %v1588_v61 = vand.u32 4294901760, %v1133_v1 }
  0x3c   :  { %378 = vmatpush.msrb.mxu0 %v1581_v31  ;;  %565 = vmatpush.msrb.mxu3 %v564_v9  ;;  %v1365_v9 = vand.u32 127, %v32_v62 }
  0x3d   :  { %429 = vmatpush.msrb.mxu1 %v979_v16  ;;  %476 = vmatpush.msrb.mxu2 %v1217_v17  ;;  %v1308_v16 = vand.u32 4294901760, %v72_v51 }
  0x3e   :  { %382 = vmatpush.msrb.mxu0 %v1582_v34  ;;  %571 = vmatpush.msrb.mxu3 %v570_v14  ;;  %v1368_v52 = vadd.s32 128, %v1365_v9  ;;  %v930_v14 = vmov 1.0   ;;  %v931_v34 = vmov 0.0  }
  0x3f   :  { %431 = vmatpush.msrb.mxu1 %v990_v21  ;;  %478 = vmatpush.msrb.mxu2 %v1229_v48  ;;  %v1585_v21 = vand.u32 4294901760, %v1087_v6  ;;  %v1331_v6 = vsub.f32 %v72_v51, %v1308_v16 }
  0x40   :  { %386 = vmatpush.msrb.mxu0 %v1583_v15  ;;  %577 = vmatpush.msrb.mxu3 %v576_v18 }
  0x41   :  { %433 = vmatpush.msrb.mxu1 %v1039_v46  ;;  %480 = vmatpush.msrb.mxu2 %v1241_v2  ;;  %v1587_v46 = vand.u32 4294901760, %v1114_v43 }
  0x42   :  { %390 = vmatpush.msrb.mxu0 %v1584_v53  ;;  %v1590_v53 = vld [vmem:[#allocation11_spill] sm:$0xff] }
  0x43   :  { %435 = vmatpush.msrb.mxu1 %v1044_v49  ;;  %482 = vmatpush.msrb.mxu2 %v1308_v16  ;;  %v1589_v49 = vld [vmem:[#allocation10_spill] sm:$0xff] }
  0x44   :  { %394 = vmatpush.msrb.mxu0 %v1585_v21  ;;  %v1591_v21 = vand.u32 4294901760, %v1590_v53 }
  0x45   :  { %437 = vmatpush.msrb.mxu1 %v1046_v50  ;;  %v71_v50 = vld [vmem:[#allocation4 + $0x90] sm:$0xff] }
  0x46   :  { %398 = vmatpush.msrb.mxu0 %v1586_v56  ;;  %v1328_v4 = vand.u32 4294901760, %v71_v50 }
  0x47   :  { %439 = vmatpush.msrb.mxu1 %v1055_v54  ;;  %v70_v54 = vld [vmem:[#allocation4 + $0x88] sm:$0xff] }
  0x48   :  { %402 = vmatpush.msrb.mxu0 %v1587_v46  ;;  %484 = vmatpush.msrb.mxu2 %v1328_v4  ;;  %v1335_v33 = vand.u32 4294901760, %v70_v54  ;;  %v1338_v43 = vsub.f32 %v71_v50, %v1328_v4 }
  0x49   :  { %441 = vmatpush.msrb.mxu1 %v1062_v57  ;;  %v580_v57 = vand.u32 4294901760, %v1331_v6 }
  0x4a   :  { %406 = vmatpush.msrb.mxu0 %v1588_v61  ;;  %486 = vmatpush.msrb.mxu2 %v1335_v33  ;;  %v586_v1 = vand.u32 4294901760, %v1338_v43  ;;  %v1348_v19 = vsub.f32 %v70_v54, %v1335_v33  ;;  %v1592_v61 = vld [vmem:[#allocation12_spill] sm:$0xff] }
  0x4b   :  { %443 = vmatpush.msrb.mxu1 %v1074_v63  ;;  %v69_v63 = vld [vmem:[#allocation4 + $0x80] sm:$0xff] }
  0x4c   :  { %v1345_v58 = vand.u32 4294901760, %v69_v63  ;;  %v587_v3 = vsub.f32 %v1338_v43, %v586_v1  ;;  %v592_v20 = vand.u32 4294901760, %v1348_v19 }
  0x4d   :  { %445 = vmatpush.msrb.mxu1 %v1089_v10  ;;  %v581_v10 = vsub.f32 %v1331_v6, %v580_v57 }
  0x4e   :  { %488 = vmatpush.msrb.mxu2 %v1345_v58  ;;  %v1356_v55 = vsub.f32 %v69_v63, %v1345_v58  ;;  %v588_v7 = vand.u32 4294901760, %v587_v3  ;;  %v593_v12 = vsub.f32 %v1348_v19, %v592_v20 }
  0x4f   :  { %447 = vmatpush.msrb.mxu1 %v1589_v49  ;;  %v582_v35 = vand.u32 4294901760, %v581_v10  ;;  %v1593_v49 = vand.u32 4294901760, %v1592_v61  ;;  %v1594_v10 = vld [vmem:[#allocation13_spill] sm:$0xff] }
  0x50   :  { %v598_v23 = vand.u32 4294901760, %v1356_v55  ;;  %v594_v8 = vand.u32 4294901760, %v593_v12 }
  0x51   :  { %583 = vmatpush.msrb.mxu3 %v582_v35  ;;  %v1595_v35 = vand.u32 4294901760, %v1594_v10 }
  0x52   :  { %v599_v13 = vsub.f32 %v1356_v55, %v598_v23 }
  0x53   :  { %589 = vmatpush.msrb.mxu3 %v588_v7  ;;  %v1596_v7 = vld [vmem:[#allocation14_spill] sm:$0xff] }
  0x54   :  { %v600_v24 = vand.u32 4294901760, %v599_v13  ;;  %v1597_v12 = vand.u32 4294901760, %v1596_v7  ;;  %v1598_v13 = vand.u32 4294901760, %v1173_v30 }
  0x55   :  { %595 = vmatpush.msrb.mxu3 %v594_v8 }
  0x57   :  { %601 = vmatpush.msrb.mxu3 %v600_v24 }
  0x7a   :  { %v1370_v31 = vpop.permute.xlu0 %36 }
  0x7b   :  { %vm41_vm0 = vcmp.eq.s32.totalorder %v1365_v9, %v1370_v31  ;;  %vm42_vm1 = vcmp.eq.s32.totalorder %v1368_v52, %v1370_v31 }
  0x7c   :  { %854 = vmatmul.msk.f32.vlgmr.msra.gmra.mxu1 %vm41_vm0, %v930_v14  ;;  %v850_v51 = vsel %vm41_vm0, 1.0, %v931_v34  ;;  %v851_v56 = vsel %vm42_vm1, 1.0, %v931_v34 }
  0x7d   :  { %671 = vmatpush.msra.mxu1 %v1108_v41  ;;  %v118_v18 = vsub.f32 %v850_v51, %v850_v51  ;;  %v1399_v63 = vsub.f32 %v851_v56, %v851_v56  ;;  %v1599_v51 = vand.u32 4294901760, %v1183_v25 }
  0x7f   :  { %289 = vmatmul.f32.vlgmr.msra.gmra.mxu2 %v118_v18  ;;  %673 = vmatpush.msra.mxu1 %v1116_v44  ;;  %v119_v15 = vand.u32 4294901760, %v118_v18 }
  0x80   :  { %718 = vmatpush.msra.mxu2 %v1591_v21 }
  0x81   :  { %333 = vmatmul.f32.vlgmr.msra.gmra.mxu3 %v119_v15  ;;  %675 = vmatpush.msra.mxu1 %v1118_v47  ;;  %v120_v46 = vsub.f32 %v118_v18, %v119_v15 }
  0x82   :  { %722 = vmatpush.msra.mxu2 %v1593_v49  ;;  %789 = vmatpush.msra.mxu3 %v1108_v41  ;;  %v1394_v50 = vpop.permute.xlu0 %39 }
  0x83   :  { %vm43_vm2 = vcmp.eq.s32.totalorder %v1365_v9, %v1394_v50  ;;  %677 = vmatpush.msra.mxu1 %v1127_v59  ;;  %v121_v54 = vand.u32 4294901760, %v120_v46  ;;  %vm44_vm3 = vcmp.eq.s32.totalorder %v1368_v52, %v1394_v50 }
  0x84   :  { %855 = vmatmul.msk.f32.gmra.mxu1 %vm43_vm2, %v930_v14  ;;  %726 = vmatpush.msra.mxu2 %v1595_v35  ;;  %v852_v41 = vsel %vm43_vm2, 1.0, %v931_v34 }
  0x85   :  { %791 = vmatpush.msra.mxu3 %v1116_v44  ;;  %122 = vmatmul.f32.vlgmr.msra.gmra.mxu0 %v121_v54  ;;  %v126_v3 = vsub.f32 %v852_v41, %v852_v41  ;;  %v491_v44 = vand.u32 4294901760, %v1399_v63 }
  0x86   :  { %679 = vmatpush.msra.mxu1 %v1146_v60  ;;  %613 = vmatpush.msra.mxu0 %v1590_v53 }
  0x87   :  { %730 = vmatpush.msra.mxu2 %v1597_v12  ;;  %793 = vmatpush.msra.mxu3 %v1118_v47  ;;  %v127_v8 = vand.u32 4294901760, %v126_v3  ;;  %v853_v47 = vsel %vm44_vm3, 1.0, %v931_v34  ;;  %v492_v18 = vsub.f32 %v1399_v63, %v491_v44 }
  0x88   :  { %294 = vmatmul.f32.gmra.mxu2 %v126_v3  ;;  %681 = vmatpush.msra.mxu1 %v1151_v29 }
  0x89   :  { %616 = vmatpush.msra.mxu0 %v1592_v61  ;;  %734 = vmatpush.msra.mxu2 %v1598_v13  ;;  %v128_v24 = vsub.f32 %v126_v3, %v127_v8 }
  0x8a   :  { %795 = vmatpush.msra.mxu3 %v1127_v59  ;;  %683 = vmatpush.msra.mxu1 %v1175_v28  ;;  %v498_v59 = vsub.f32 %v853_v47, %v853_v47 }
  0x8b   :  { %339 = vmatmul.f32.gmra.mxu3 %v127_v8  ;;  %619 = vmatpush.msra.mxu0 %v1594_v10  ;;  %v129_v62 = vand.u32 4294901760, %v128_v24 }
  0x8c   :  { %738 = vmatpush.msra.mxu2 %v1599_v51  ;;  %797 = vmatpush.msra.mxu3 %v1146_v60  ;;  %v493_v60 = vand.u32 4294901760, %v492_v18  ;;  %v499_v34 = vand.u32 4294901760, %v498_v59 }
  0x8d   :  { %685 = vmatpush.msra.mxu1 %v1190_v26  ;;  %622 = vmatpush.msra.mxu0 %v1596_v7 }
  0x8e   :  { %858 = vmatmul.msk.f32.vlgmr.msrb.gmra.mxu1 %vm41_vm0, %v930_v14  ;;  %742 = vmatpush.msra.mxu2 %v544_v36 }
  0x8f   :  { %799 = vmatpush.msra.mxu3 %v1151_v29  ;;  %130 = vmatmul.f32.gmra.mxu0 %v129_v62 }
  0x90   :  { %687 = vmatpush.msra.mxu1 %v1205_v45  ;;  %625 = vmatpush.msra.mxu0 %v1173_v30 }
  0x91   :  { %746 = vmatpush.msra.mxu2 %v550_v37  ;;  %801 = vmatpush.msra.mxu3 %v1175_v28  ;;  %v500_v28 = vsub.f32 %v498_v59, %v499_v34 }
  0x92   :  { %494 = vmatmul.f32.vlgmr.msrb.gmra.mxu2 %v493_v60  ;;  %689 = vmatpush.msra.mxu1 %v1217_v17 }
  0x93   :  { %628 = vmatpush.msra.mxu0 %v1183_v25  ;;  %750 = vmatpush.msra.mxu2 %v556_v22 }
  0x94   :  { %803 = vmatpush.msra.mxu3 %v1190_v26  ;;  %691 = vmatpush.msra.mxu1 %v1229_v48  ;;  %v501_v26 = vand.u32 4294901760, %v500_v28 }
  0x95   :  { %860 = vmatmul.msk.f32.vlgmr.msrb.gmra.mxu3 %vm42_vm1, %v930_v14  ;;  %631 = vmatpush.msra.mxu0 %v1203_v27 }
  0x96   :  { %754 = vmatpush.msra.mxu2 %v562_v39  ;;  %805 = vmatpush.msra.mxu3 %v1205_v45 }
  0x97   :  { %693 = vmatpush.msra.mxu1 %v1241_v2  ;;  %634 = vmatpush.msra.mxu0 %v1215_v32 }
  0x98   :  { %859 = vmatmul.msk.f32.gmra.mxu1 %vm43_vm2, %v930_v14  ;;  %758 = vmatpush.msra.mxu2 %v568_v5 }
  0x99   :  { %807 = vmatpush.msra.mxu3 %v1217_v17  ;;  %856 = vmatmul.msk.f32.vlgmr.msrb.gmra.mxu0 %vm41_vm0, %v930_v14 }
  0x9a   :  { %695 = vmatpush.msra.mxu1 %v1308_v16  ;;  %637 = vmatpush.msra.mxu0 %v1227_v42 }
  0x9b   :  { %762 = vmatpush.msra.mxu2 %v574_v40  ;;  %809 = vmatpush.msra.mxu3 %v1229_v48 }
  0x9c   :  { %502 = vmatmul.f32.gmra.mxu2 %v501_v26  ;;  %697 = vmatpush.msra.mxu1 %v1328_v4 }
  0x9d   :  { %640 = vmatpush.msra.mxu0 %v1239_v0  ;;  %766 = vmatpush.msra.mxu2 %v580_v57 }
  0x9e   :  { %811 = vmatpush.msra.mxu3 %v1241_v2  ;;  %699 = vmatpush.msra.mxu1 %v1335_v33 }
  0x9f   :  { %861 = vmatmul.msk.f32.gmra.mxu3 %vm44_vm3, %v930_v14  ;;  %643 = vmatpush.msra.mxu0 %v1251_v38 }
  0xa0   :  { %770 = vmatpush.msra.mxu2 %v586_v1  ;;  %813 = vmatpush.msra.mxu3 %v1308_v16 }
  0xa1   :  { %701 = vmatpush.msra.mxu1 %v1345_v58  ;;  %646 = vmatpush.msra.mxu0 %v1262_v11 }
  0xa2   :  { %705 = vmatmul.f32.vlgmr.msra.gmra.mxu1 %v491_v44  ;;  %774 = vmatpush.msra.mxu2 %v592_v20 }
  0xa3   :  { %815 = vmatpush.msra.mxu3 %v1328_v4  ;;  %857 = vmatmul.msk.f32.gmra.mxu0 %vm43_vm2, %v930_v14 }
  0xa4   :  { %649 = vmatpush.msra.mxu0 %v1331_v6  ;;  %778 = vmatpush.msra.mxu2 %v598_v23 }
  0xa5   :  { %817 = vmatpush.msra.mxu3 %v1335_v33  ;;  %862 = vmatmul.msk.f32.vlgmr.msra.gmra.mxu2 %vm42_vm1, %v930_v14 }
  0xa6   :  { %652 = vmatpush.msra.mxu0 %v1338_v43 }
  0xa7   :  { %819 = vmatpush.msra.mxu3 %v1345_v58 }
  0xa8   :  { %864 = vmatmul.msk.f32.vlgmr.msra.gmra.mxu3 %vm42_vm1, %v930_v14  ;;  %655 = vmatpush.msra.mxu0 %v1348_v19 }
  0xaa   :  { %658 = vmatpush.msra.mxu0 %v1356_v55  ;;  %711 = vmatmul.f32.gmra.mxu1 %v499_v34 }
  0xab   :  { %661 = vmatmul.f32.vlgmr.msra.gmra.mxu0 %v1399_v63 }
  0xad   :  { %863 = vmatmul.msk.f32.gmra.mxu2 %vm44_vm3, %v930_v14 }
  0xb0   :  { %865 = vmatmul.msk.f32.gmra.mxu3 %vm44_vm3, %v930_v14 }
  0xb3   :  { %666 = vmatmul.f32.gmra.mxu0 %v498_v59 }
  0xf9   :  { %v232_v27 = vpop.f32.mrf.mxu1 }
 0x101   :  { %v236_v17 = vpop.f32.mrf.mxu1 }
 0x102   :  { %v123_v30 = vpop.f32.mrf.mxu0  ;;  %v290_v45 = vpop.f32.mrf.mxu2 }
 0x103   :  { %v233_v36 = vadd.f32 %v232_v27, %v123_v30 }
 0x104   :  { %v334_v48 = vpop.f32.mrf.mxu3 }
 0x105   :  { %v291_v37 = vadd.f32 %v290_v45, %v233_v36 }
 0x107   :  { %v335_v38 = vadd.f32 %v334_v48, %v291_v37 }
 0x10b   :  { %v295_v25 = vpop.f32.mrf.mxu2  ;;  %v450_v42 = vpop.f32.mrf.mxu1 }
 0x10c   :  { %v131_v29 = vpop.f32.mrf.mxu0 }
 0x10d   :  { %v237_v39 = vadd.f32 %v236_v17, %v131_v29 }
 0x10e   :  { %v340_v32 = vpop.f32.mrf.mxu3 }
 0x10f   :  { %v296_v5 = vadd.f32 %v295_v25, %v237_v39 }
 0x111   :  { %v341_v57 = vadd.f32 %v340_v32, %v296_v5 }
 0x115   :  { %v495_v2 = vpop.f32.mrf.mxu2  ;;  %v454_v40 = vpop.f32.mrf.mxu1 }
 0x116   :  { %v409_v0 = vpop.f32.mrf.mxu0 }
 0x117   :  { %v410_v11 = vadd.f32 %v409_v0, %v335_v38 }
 0x118   :  { %v604_v22 = vpop.f32.mrf.mxu3 }
 0x119   :  { %v451_v16 = vadd.f32 %v450_v42, %v410_v11 }
 0x11b   :  { %v496_v43 = vadd.f32 %v495_v2, %v451_v16 }
 0x11d   :  { %v605_v58 = vadd.f32 %v604_v22, %v496_v43 }
 0x11f   :  { %v503_v6 = vpop.f32.mrf.mxu2  ;;  %v706_v20 = vpop.f32.mrf.mxu1 }
 0x120   :  { %v413_v4 = vpop.f32.mrf.mxu0 }
 0x121   :  { %v414_v1 = vadd.f32 %v413_v4, %v341_v57 }
 0x122   :  { %v608_v33 = vpop.f32.mrf.mxu3 }
 0x123   :  { %v455_v19 = vadd.f32 %v454_v40, %v414_v1 }
 0x125   :  { %v504_v52 = vadd.f32 %v503_v6, %v455_v19 }
 0x127   :  { %v609_v53 = vadd.f32 %v608_v33, %v504_v52  ;;  %v712_v61 = vpop.f32.mrf.mxu1 }
 0x128   :  { %v662_v55 = vpop.f32.mrf.mxu0  ;;  %v781_v9 = vpop.f32.mrf.mxu2 }
 0x129   :  { %v663_v23 = vadd.f32 %v662_v55, %v605_v58 }
 0x12b   :  { %v707_v31 = vadd.f32 %v706_v20, %v663_v23  ;;  %v822_v14 = vpop.f32.mrf.mxu3 }
 0x12d   :  { %v782_v15 = vadd.f32 %v781_v9, %v707_v31 }
 0x12f   :  { %v823_v21 = vadd.f32 %v822_v14, %v782_v15 }
 0x130   :  { %v667_v56 = vpop.f32.mrf.mxu0  ;;  %v785_v50 = vpop.f32.mrf.mxu2 }
 0x131   :  { %829 = vst [vmem:[#allocation7] sm:$0xff] %v823_v21  ;;  %v668_v46 = vadd.f32 %v667_v56, %v609_v53 }
 0x133   :  { %v713_v49 = vadd.f32 %v712_v61, %v668_v46  ;;  %v826_v63 = vpop.f32.mrf.mxu3 }
 0x135   :  { %v786_v54 = vadd.f32 %v785_v50, %v713_v49 }
 0x137   :  { %v827_v10 = vadd.f32 %v826_v63, %v786_v54 }
 0x139   :  { %830 = vst [vmem:[#allocation7 + $0x8] sm:$0xff] %v827_v10 }
 0x13a   :  { %843 = dma.vmem_to_hbm [thread:$0]  %s836_s21, 256, %s838_s24, [#allocation6], %s927_s0, %s927_s0, %s928_s17  }
 0x13b   :  { %924 = dma.done.wait [#allocation6], 256  }
 0x13c   :  { %925 = vsyncadd [#allocation6], 4294967040 }
 0x13d   :  { %848 = vsyncpa [#allocation5], 1 }
 0x13e   :  { %849 = vsyncpa [#allocation6], 1 }

</bundles_post_ra>
